<compile_context>
chip_gen: v6e
topology: v6e:2x2x1
jax: 0.10.0
libtpu: 0.0.40
codegen_flags: <defaults>
</compile_context>

<pallas_src>
import jax
import jax.numpy as jnp
from jax import lax
from jax.experimental import pallas as pl
from jax.experimental.pallas import tpu as pltpu

EPS = 1e-5


def bn_relu_kernel(x_ref, gamma_ref, beta_ref, o_ref):
    # x_ref: (TC, L) f32 slab (channels on sublanes, spatial/batch on lanes)
    # gamma_ref/beta_ref: (TC, 1)
    x = x_ref[...].astype(jnp.float32)
    l = x.shape[-1]
    inv_l = 1.0 / l

    # One-pass batch statistics.  Route the lane-axis reductions to the idle MXU
    # (a (TC,L)x(L,1) matmul) instead of the XLU cross-lane reduce.
    ones_col = jnp.ones((l, 1), dtype=jnp.float32)
    s = jnp.dot(x, ones_col, preferred_element_type=jnp.float32)        # (TC, 1)
    sq = jnp.dot(x * x, ones_col, preferred_element_type=jnp.float32)   # (TC, 1)

    mean = s * inv_l
    # Clamp: E[x^2]-E[x]^2 can go slightly negative from f32 cancellation -> NaN in rsqrt.
    var = jnp.maximum(sq * inv_l - mean * mean, 0.0)

    # Per-channel affine folded into a single mul+add per element.
    scale = gamma_ref[...] * lax.rsqrt(var + EPS)
    shift = beta_ref[...] - mean * scale

    y = x * scale + shift
    o_ref[...] = jnp.maximum(y, 0.0).astype(o_ref.dtype)


def _tensorcores_per_chip():
    """v7x has 2 TensorCores per chip; v5e/v6e have 1.  Best-effort detection."""
    try:
        kind = (jax.devices()[0].device_kind or "").lower()
    except Exception:
        return 1
    return 2 if "v7" in kind else 1


def batchnorm_relu(x_nchw, gamma, beta):
    """x_nchw: (N, C, H, W) float32; gamma, beta: (C,) float32."""
    n, c, h, w = x_nchw.shape
    l = n * h * w

    # (N, C, H, W) -> (C, N*H*W).  For N == 1 this is a metadata-only reshape.
    if n == 1:
        x_cl = x_nchw.reshape(c, l)
    else:
        x_cl = jnp.transpose(x_nchw, (1, 0, 2, 3)).reshape(c, l)

    gamma2 = gamma.reshape(c, 1)
    beta2 = beta.reshape(c, 1)

    # Tile selection: single full-C tile (grid=(1,)) on 1-TC chips; split in two
    # 128-channel slabs on v7x so both TensorCores get work.  Never split finer —
    # extra grid steps are pure overhead on this latency-bound kernel.
    n_tc = _tensorcores_per_chip()
    if n_tc == 2 and c % 2 == 0 and (c // 2) % 8 == 0:
        tc = c // 2
    else:
        tc = c
    grid = (c // tc,)

    out_cl = pl.pallas_call(
        bn_relu_kernel,
        out_shape=jax.ShapeDtypeStruct((c, l), x_nchw.dtype),
        grid_spec=pltpu.PrefetchScalarGridSpec(
            num_scalar_prefetch=0,
            grid=grid,
            in_specs=[
                pl.BlockSpec((tc, l), lambda i: (i, 0)),
                pl.BlockSpec((tc, 1), lambda i: (i, 0)),
                pl.BlockSpec((tc, 1), lambda i: (i, 0)),
            ],
            out_specs=pl.BlockSpec((tc, l), lambda i: (i, 0)),
        ),
        compiler_params=pltpu.CompilerParams(
            dimension_semantics=("parallel",)
        ),
    )(x_cl, gamma2, beta2)

    # (C, N*H*W) -> (N, C, H, W).  Metadata-only for N == 1.
    if n == 1:
        return out_cl.reshape(1, c, h, w)
    return jnp.transpose(out_cl.reshape(c, n, h, w), (1, 0, 2, 3))


def batchnorm_relu_ref(x_nchw, gamma, beta):
    mean = jnp.mean(x_nchw, axis=(0, 2, 3), keepdims=True)
    var = jnp.mean((x_nchw - mean) ** 2, axis=(0, 2, 3), keepdims=True)
    y = (x_nchw - mean) * lax.rsqrt(var + EPS)
    y = y * gamma.reshape(1, -1, 1, 1) + beta.reshape(1, -1, 1, 1)
    return jnp.maximum(y, 0.0)


if __name__ == "__main__":
    key = jax.random.PRNGKey(0)
    kx, kg, kb = jax.random.split(key, 3)

    # Shapes implied by the module: x208 = randn([1, 256, 14, 14])
    N, C, H, W = 1, 256, 14, 14
    x = jax.random.normal(kx, (N, C, H, W), dtype=jnp.float32)
    gamma = 1.0 + 0.1 * jax.random.normal(kg, (C,), dtype=jnp.float32)
    beta = 0.1 * jax.random.normal(kb, (C,), dtype=jnp.float32)

    out = batchnorm_relu(x, gamma, beta)
    out = jax.block_until_ready(out)

    ref = batchnorm_relu_ref(x, gamma, beta)
    assert out.shape == (N, C, H, W)
    assert jnp.allclose(out, ref, atol=1e-4, rtol=1e-4), float(
        jnp.max(jnp.abs(out - ref))
    )
    print("KERNEL_OK")
</pallas_src>

<mosaic_0001>
module attributes {stable_mosaic.version = 11 : i64} {
  func.func @bn_relu_kernel(%arg0: i32, %arg1: memref<256x196xf32, #tpu.memory_space<vmem>>, %arg2: memref<256x1xf32, #tpu.memory_space<vmem>>, %arg3: memref<256x1xf32, #tpu.memory_space<vmem>>, %arg4: memref<256x196xf32, #tpu.memory_space<vmem>>) attributes {dimension_semantics = [#tpu.dimension_semantics<parallel>], iteration_bounds = array<i64: 1>, scalar_prefetch = 0 : i64, scratch_operands = 0 : i64, tpu.core_type = #tpu.core_type<tc>, window_params = [{transform_indices = @transform_0, window_bounds = array<i64: 256, 196>}, {transform_indices = @transform_1, window_bounds = array<i64: 256, 1>}, {transform_indices = @transform_2, window_bounds = array<i64: 256, 1>}, {transform_indices = @transform_3, window_bounds = array<i64: 256, 196>}]} {
    %c0 = arith.constant 0 : index
    %c0_0 = arith.constant 0 : index
    %0 = vector.load %arg1[%c0, %c0_0] : memref<256x196xf32, #tpu.memory_space<vmem>>, vector<256x196xf32>
    %cst = arith.constant 1.000000e+00 : f32
    %1 = vector.broadcast %cst : f32 to vector<196x1xf32>
    %cst_1 = arith.constant dense<0.000000e+00> : vector<256x1xf32>
    %2 = tpu.matmul %0, %1, %cst_1 {dimension_numbers = #tpu.dot_dimension_numbers<[1], [0], [0], [1], [0, 0, 1, 1], [], []>} : vector<256x196xf32>, vector<196x1xf32>, vector<256x1xf32> -> vector<256x1xf32>
    %3 = arith.mulf %0, %0 : vector<256x196xf32>
    %cst_2 = arith.constant dense<0.000000e+00> : vector<256x1xf32>
    %4 = tpu.matmul %3, %1, %cst_2 {dimension_numbers = #tpu.dot_dimension_numbers<[1], [0], [0], [1], [0, 0, 1, 1], [], []>} : vector<256x196xf32>, vector<196x1xf32>, vector<256x1xf32> -> vector<256x1xf32>
    %cst_3 = arith.constant 0.00510204071 : f32
    %5 = vector.broadcast %cst_3 : f32 to vector<256x1xf32>
    %6 = arith.mulf %2, %5 : vector<256x1xf32>
    %cst_4 = arith.constant 0.00510204071 : f32
    %7 = vector.broadcast %cst_4 : f32 to vector<256x1xf32>
    %8 = arith.mulf %4, %7 : vector<256x1xf32>
    %9 = arith.mulf %6, %6 : vector<256x1xf32>
    %10 = arith.subf %8, %9 : vector<256x1xf32>
    %cst_5 = arith.constant 0.000000e+00 : f32
    %11 = vector.broadcast %cst_5 : f32 to vector<256x1xf32>
    %12 = arith.maximumf %10, %11 : vector<256x1xf32>
    %c0_6 = arith.constant 0 : index
    %c0_7 = arith.constant 0 : index
    %13 = vector.load %arg2[%c0_6, %c0_7] : memref<256x1xf32, #tpu.memory_space<vmem>>, vector<256x1xf32>
    %cst_8 = arith.constant 9.99999974E-6 : f32
    %14 = vector.broadcast %cst_8 : f32 to vector<256x1xf32>
    %15 = arith.addf %12, %14 : vector<256x1xf32>
    %16 = math.rsqrt %15 : vector<256x1xf32>
    %17 = arith.mulf %13, %16 : vector<256x1xf32>
    %c0_9 = arith.constant 0 : index
    %c0_10 = arith.constant 0 : index
    %18 = vector.load %arg3[%c0_9, %c0_10] : memref<256x1xf32, #tpu.memory_space<vmem>>, vector<256x1xf32>
    %19 = arith.mulf %6, %17 : vector<256x1xf32>
    %20 = arith.subf %18, %19 : vector<256x1xf32>
    %21 = vector.broadcast %17 : vector<256x1xf32> to vector<256x196xf32>
    %22 = arith.mulf %0, %21 : vector<256x196xf32>
    %23 = vector.broadcast %20 : vector<256x1xf32> to vector<256x196xf32>
    %24 = arith.addf %22, %23 : vector<256x196xf32>
    %cst_11 = arith.constant 0.000000e+00 : f32
    %25 = vector.broadcast %cst_11 : f32 to vector<256x196xf32>
    %26 = arith.maximumf %24, %25 : vector<256x196xf32>
    %c0_12 = arith.constant 0 : index
    %c0_13 = arith.constant 0 : index
    %27 = vector.load %arg4[%c0_12, %c0_13] : memref<256x196xf32, #tpu.memory_space<vmem>>, vector<256x196xf32>
    tpu.vector_store %arg4[%c0_12, %c0_13], %26 {strides = array<i32>} : memref<256x196xf32, #tpu.memory_space<vmem>>, vector<256x196xf32>,
    return
  }
  func.func @transform_0(%arg0: i32) -> (i32, i32) {
    %c0_i32 = arith.constant 0 : i32
    %c0_i32_0 = arith.constant 0 : i32
    return %arg0, %c0_i32 : i32, i32
  }
  func.func @transform_1(%arg0: i32) -> (i32, i32) {
    %c0_i32 = arith.constant 0 : i32
    %c0_i32_0 = arith.constant 0 : i32
    return %arg0, %c0_i32 : i32, i32
  }
  func.func @transform_2(%arg0: i32) -> (i32, i32) {
    %c0_i32 = arith.constant 0 : i32
    %c0_i32_0 = arith.constant 0 : i32
    return %arg0, %c0_i32 : i32, i32
  }
  func.func @transform_3(%arg0: i32) -> (i32, i32) {
    %c0_i32 = arith.constant 0 : i32
    %c0_i32_0 = arith.constant 0 : i32
    return %arg0, %c0_i32 : i32, i32
  }
}

</mosaic_0001>

<bundles_post_ra>
// kernel: tpu_custom_call.1
= control target key start
LH: loop header
LB: loop body
LE: loop exit
PB: predicated region body
PF: predicated region fallthrough
CT: control target
= control target key end

     0   :  { %v1952_v0 = vmov 0.0   ;;  %v1953_v1 = vmov 1.0   ;;  %vm175_vm0 = vcmask 1043456   ;;  %vm78_vm1 = vcmask 556032   ;;  %s3099_s0 = inlined_call_operand.vmem [shape: f32[256,196], index: 0, kind: input, shape index: {}]   ;;  %s3100_s1 = inlined_call_operand.vmem [shape: f32[256,1], index: 1, kind: input, shape index: {}]   ;;  %s3101_s2 = inlined_call_operand.vmem [shape: f32[256,1], index: 2, kind: input, shape index: {}]   ;;  %s3102_s3 = inlined_call_operand.vmem [shape: f32[256,196], index: 3, kind: output, shape index: {}]  }
   0x1   :  { %179 = vmatprep.subr.mxu0 %v1952_v0  ;;  %564 = vmatprep.subr.mxu1 %v1952_v0  ;;  %v15_v2 = vld [vmem:[%s3099_s0 + $0x8] sm:$0xff]  ;;  %v14_v3 = vld [vmem:[%s3099_s0] sm:$0xff]  ;;  %v17_v4 = vld [vmem:[%s3099_s0 + $0x18] sm:$0xff] }
   0x2   :  { %180 = vmatpush1.msra.mxu0 %v1953_v1  ;;  %565 = vmatpush1.msra.mxu1 %v1953_v1  ;;  %v405_v5 = vmul.f32 %v15_v2, %v15_v2  ;;  %v404_v6 = vmul.f32 %v14_v3, %v14_v3  ;;  %v407_v7 = vmul.f32 %v17_v4, %v17_v4  ;;  %v16_v8 = vld [vmem:[%s3099_s0 + $0x10] sm:$0xff]  ;;  %v19_v9 = vld [vmem:[%s3099_s0 + $0x28] sm:$0xff]  ;;  %v18_v12 = vld [vmem:[%s3099_s0 + $0x20] sm:$0xff] }
   0x3   :  { %181 = vmatprep.subr.mxu0 %v1952_v0  ;;  %566 = vmatprep.subr.mxu1 %v1952_v0  ;;  %v406_v10 = vmul.f32 %v16_v8, %v16_v8  ;;  %v409_v11 = vmul.f32 %v19_v9, %v19_v9  ;;  %v21_v13 = vld [vmem:[%s3099_s0 + $0x38] sm:$0xff]  ;;  %v408_v14 = vmul.f32 %v18_v12, %v18_v12  ;;  %v20_v16 = vld [vmem:[%s3099_s0 + $0x30] sm:$0xff]  ;;  %v23_v17 = vld [vmem:[%s3099_s0 + $0x48] sm:$0xff] }
   0x4   :  { %182 = vmatpush1.msra.mxu0 %v1953_v1  ;;  %567 = vmatpush1.msra.mxu1 %v1953_v1  ;;  %v411_v15 = vmul.f32 %v21_v13, %v21_v13  ;;  %v410_v18 = vmul.f32 %v20_v16, %v20_v16  ;;  %v413_v19 = vmul.f32 %v23_v17, %v23_v17  ;;  %v22_v20 = vld [vmem:[%s3099_s0 + $0x40] sm:$0xff]  ;;  %v25_v21 = vld [vmem:[%s3099_s0 + $0x58] sm:$0xff]  ;;  %v24_v24 = vld [vmem:[%s3099_s0 + $0x50] sm:$0xff] }
   0x5   :  { %183 = vmatprep.subr.mxu0 %v1952_v0  ;;  %568 = vmatprep.subr.mxu1 %v1952_v0  ;;  %v412_v22 = vmul.f32 %v22_v20, %v22_v20  ;;  %v415_v23 = vmul.f32 %v25_v21, %v25_v21  ;;  %v27_v25 = vld [vmem:[%s3099_s0 + $0x68] sm:$0xff]  ;;  %v414_v26 = vmul.f32 %v24_v24, %v24_v24  ;;  %v26_v28 = vld [vmem:[%s3099_s0 + $0x60] sm:$0xff]  ;;  %v29_v29 = vld [vmem:[%s3099_s0 + $0x78] sm:$0xff] }
   0x6   :  { %184 = vmatpush1.msra.mxu0 %v1953_v1  ;;  %569 = vmatpush1.msra.mxu1 %v1953_v1  ;;  %v417_v27 = vmul.f32 %v27_v25, %v27_v25  ;;  %v416_v30 = vmul.f32 %v26_v28, %v26_v28  ;;  %v419_v31 = vmul.f32 %v29_v29, %v29_v29  ;;  %v28_v32 = vld [vmem:[%s3099_s0 + $0x70] sm:$0xff]  ;;  %v31_v33 = vld [vmem:[%s3099_s0 + $0x88] sm:$0xff]  ;;  %v30_v36 = vld [vmem:[%s3099_s0 + $0x80] sm:$0xff] }
   0x7   :  { %185 = vmatprep.subr.mxu0 %v1952_v0  ;;  %570 = vmatprep.subr.mxu1 %v1952_v0  ;;  %v418_v34 = vmul.f32 %v28_v32, %v28_v32  ;;  %v421_v35 = vmul.f32 %v31_v33, %v31_v33  ;;  %v33_v37 = vld [vmem:[%s3099_s0 + $0x98] sm:$0xff]  ;;  %v420_v38 = vmul.f32 %v30_v36, %v30_v36  ;;  %v32_v40 = vld [vmem:[%s3099_s0 + $0x90] sm:$0xff]  ;;  %v35_v41 = vld [vmem:[%s3099_s0 + $0xa8] sm:$0xff] }
   0x8   :  { %186 = vmatpush1.msra.mxu0 %v1953_v1  ;;  %571 = vmatpush1.msra.mxu1 %v1953_v1  ;;  %v423_v39 = vmul.f32 %v33_v37, %v33_v37  ;;  %v422_v42 = vmul.f32 %v32_v40, %v32_v40  ;;  %v425_v43 = vmul.f32 %v35_v41, %v35_v41  ;;  %v34_v44 = vld [vmem:[%s3099_s0 + $0xa0] sm:$0xff]  ;;  %v37_v45 = vld [vmem:[%s3099_s0 + $0xb8] sm:$0xff]  ;;  %v36_v48 = vld [vmem:[%s3099_s0 + $0xb0] sm:$0xff] }
   0x9   :  { %187 = vmatprep.subr.mxu0 %v1952_v0  ;;  %572 = vmatprep.subr.mxu1 %v1952_v0  ;;  %v424_v46 = vmul.f32 %v34_v44, %v34_v44  ;;  %v427_v47 = vmul.f32 %v37_v45, %v37_v45  ;;  %v39_v49 = vld [vmem:[%s3099_s0 + $0xc8] sm:$0xff]  ;;  %v426_v50 = vmul.f32 %v36_v48, %v36_v48  ;;  %v38_v52 = vld [vmem:[%s3099_s0 + $0xc0] sm:$0xff]  ;;  %v41_v53 = vld [vmem:[%s3099_s0 + $0xd8] sm:$0xff] }
   0xa   :  { %188 = vmatpush1.msra.mxu0 %v1953_v1  ;;  %573 = vmatpush1.msra.mxu1 %v1953_v1  ;;  %v429_v51 = vmul.f32 %v39_v49, %v39_v49  ;;  %v428_v54 = vmul.f32 %v38_v52, %v38_v52  ;;  %v431_v55 = vmul.f32 %v41_v53, %v41_v53  ;;  %v40_v56 = vld [vmem:[%s3099_s0 + $0xd0] sm:$0xff]  ;;  %v43_v57 = vld [vmem:[%s3099_s0 + $0xe8] sm:$0xff]  ;;  %v42_v60 = vld [vmem:[%s3099_s0 + $0xe0] sm:$0xff] }
   0xb   :  { %189 = vmatprep.subr.mxu0 %v1952_v0  ;;  %574 = vmatprep.subr.mxu1 %v1952_v0  ;;  %v430_v58 = vmul.f32 %v40_v56, %v40_v56  ;;  %v433_v59 = vmul.f32 %v43_v57, %v43_v57  ;;  %v45_v61 = vld [vmem:[%s3099_s0 + $0xf8] sm:$0xff]  ;;  %v432_v62 = vmul.f32 %v42_v60, %v42_v60 }
   0xc   :  { %190 = vmatpush1.msra.mxu0 %v1953_v1  ;;  %575 = vmatpush1.msra.mxu1 %v1953_v1  ;;  %v435_v63 = vmul.f32 %v45_v61, %v45_v61 }
   0xd   :  { %191 = vmatprep.subr.mxu0 %v1952_v0  ;;  %576 = vmatprep.subr.mxu1 %v1952_v0 }
   0xe   :  { %192 = vmatpush1.msra.mxu0 %v1953_v1  ;;  %577 = vmatpush1.msra.mxu1 %v1953_v1 }
   0xf   :  { %193 = vmatprep.subr.mxu0 %v1952_v0  ;;  %578 = vmatprep.subr.mxu1 %v1952_v0 }
  0x10   :  { %194 = vmatpush1.msra.mxu0 %v1953_v1  ;;  %579 = vmatpush1.msra.mxu1 %v1953_v1 }
  0x11   :  { %195 = vmatprep.subr.mxu0 %v1952_v0  ;;  %580 = vmatprep.subr.mxu1 %v1952_v0 }
  0x12   :  { %196 = vmatpush1.msra.mxu0 %v1953_v1  ;;  %581 = vmatpush1.msra.mxu1 %v1953_v1 }
  0x13   :  { %197 = vmatprep.subr.mxu0 %v1952_v0  ;;  %582 = vmatprep.subr.mxu1 %v1952_v0 }
  0x14   :  { %198 = vmatpush1.msra.mxu0 %v1953_v1  ;;  %583 = vmatpush1.msra.mxu1 %v1953_v1 }
  0x15   :  { %199 = vmatprep.subr.mxu0 %v1952_v0  ;;  %584 = vmatprep.subr.mxu1 %v1952_v0 }
  0x16   :  { %200 = vmatpush1.msra.mxu0 %v1953_v1  ;;  %585 = vmatpush1.msra.mxu1 %v1953_v1 }
  0x17   :  { %201 = vmatprep.subr.mxu0 %v1952_v0  ;;  %586 = vmatprep.subr.mxu1 %v1952_v0 }
  0x18   :  { %202 = vmatpush1.msra.mxu0 %v1953_v1  ;;  %587 = vmatpush1.msra.mxu1 %v1953_v1 }
  0x19   :  { %203 = vmatprep.subr.mxu0 %v1952_v0  ;;  %588 = vmatprep.subr.mxu1 %v1952_v0 }
  0x1a   :  { %204 = vmatpush1.msra.mxu0 %v1953_v1  ;;  %589 = vmatpush1.msra.mxu1 %v1953_v1 }
  0x1b   :  { %205 = vmatprep.subr.mxu0 %v1952_v0  ;;  %590 = vmatprep.subr.mxu1 %v1952_v0 }
  0x1c   :  { %206 = vmatpush1.msra.mxu0 %v1953_v1  ;;  %591 = vmatpush1.msra.mxu1 %v1953_v1 }
  0x1d   :  { %207 = vmatprep.subr.mxu0 %v1952_v0  ;;  %592 = vmatprep.subr.mxu1 %v1952_v0 }
  0x1e   :  { %208 = vmatpush1.msra.mxu0 %v1953_v1  ;;  %593 = vmatpush1.msra.mxu1 %v1953_v1 }
  0x1f   :  { %209 = vmatprep.subr.mxu0 %v1952_v0  ;;  %594 = vmatprep.subr.mxu1 %v1952_v0 }
  0x20   :  { %210 = vmatpush1.msra.mxu0 %v1953_v1  ;;  %595 = vmatpush1.msra.mxu1 %v1953_v1 }
  0x21   :  { %225 = vmatprep.subr.mxu0 %v1952_v0  ;;  %610 = vmatprep.subr.mxu1 %v1952_v0 }
  0x22   :  { %1753 = vmatpush2.msk.msra.mxu0 %vm175_vm0, %v1953_v1  ;;  %1786 = vmatpush2.msk.msra.mxu1 %vm175_vm0, %v1953_v1 }
  0x23   :  { %227 = vmatprep.subr.mxu0 %v1952_v0  ;;  %612 = vmatprep.subr.mxu1 %v1952_v0 }
  0x24   :  { %228 = vmatpush2.msra.mxu0 %v1953_v1  ;;  %613 = vmatpush2.msra.mxu1 %v1953_v1 }
  0x25   :  { %229 = vmatprep.subr.mxu0 %v1952_v0  ;;  %614 = vmatprep.subr.mxu1 %v1952_v0 }
  0x26   :  { %230 = vmatpush2.msra.mxu0 %v1953_v1  ;;  %615 = vmatpush2.msra.mxu1 %v1953_v1 }
  0x27   :  { %231 = vmatprep.subr.mxu0 %v1952_v0  ;;  %616 = vmatprep.subr.mxu1 %v1952_v0 }
  0x28   :  { %232 = vmatpush2.msra.mxu0 %v1953_v1  ;;  %617 = vmatpush2.msra.mxu1 %v1953_v1 }
  0x29   :  { %233 = vmatprep.subr.mxu0 %v1952_v0  ;;  %618 = vmatprep.subr.mxu1 %v1952_v0 }
  0x2a   :  { %234 = vmatpush2.msra.mxu0 %v1953_v1  ;;  %619 = vmatpush2.msra.mxu1 %v1953_v1 }
  0x2b   :  { %235 = vmatprep.subr.mxu0 %v1952_v0  ;;  %620 = vmatprep.subr.mxu1 %v1952_v0 }
  0x2c   :  { %236 = vmatpush2.msra.mxu0 %v1953_v1  ;;  %621 = vmatpush2.msra.mxu1 %v1953_v1 }
  0x2d   :  { %237 = vmatprep.subr.mxu0 %v1952_v0  ;;  %622 = vmatprep.subr.mxu1 %v1952_v0 }
  0x2e   :  { %238 = vmatpush2.msra.mxu0 %v1953_v1  ;;  %623 = vmatpush2.msra.mxu1 %v1953_v1 }
  0x2f   :  { %239 = vmatprep.subr.mxu0 %v1952_v0  ;;  %624 = vmatprep.subr.mxu1 %v1952_v0 }
  0x30   :  { %240 = vmatpush2.msra.mxu0 %v1953_v1  ;;  %625 = vmatpush2.msra.mxu1 %v1953_v1 }
  0x31   :  { %241 = vmatprep.subr.mxu0 %v1952_v0  ;;  %626 = vmatprep.subr.mxu1 %v1952_v0  ;;  %v44_v0 = vld [vmem:[%s3099_s0 + $0xf0] sm:$0xff] }
  0x32   :  { %242 = vmatpush2.msra.mxu0 %v1953_v1  ;;  %1754 = vmatprep.mubr.msk.f32.mxu0 %vm78_vm1, %v15_v2  ;;  %v434_v2 = vmul.f32 %v44_v0, %v44_v0 }
  0x33   :  { %627 = vmatpush2.msra.mxu1 %v1953_v1  ;;  %1787 = vmatprep.mubr.msk.f32.mxu1 %vm78_vm1, %v405_v5  ;;  %v47_v1 = vld [vmem:[%s3099_s0 + $0x108] sm:$0xff]  ;;  %v49_v5 = vld [vmem:[%s3099_s0 + $0x118] sm:$0xff] }
  0x34   :  { %244 = vmatmul.mubr.f32.vlgmr.msra.gmra.mxu0 %v14_v3  ;;  %629 = vmatmul.mubr.f32.vlgmr.msra.gmra.mxu1 %v404_v6  ;;  %v437_v3 = vmul.f32 %v47_v1, %v47_v1 }
  0x35   :  { %1755 = vmatprep.mubr.msk.f32.mxu0 %vm78_vm1, %v17_v4  ;;  %1788 = vmatprep.mubr.msk.f32.mxu1 %vm78_vm1, %v407_v7  ;;  %v46_v4 = vld [vmem:[%s3099_s0 + $0x100] sm:$0xff]  ;;  %v439_v7 = vmul.f32 %v49_v5, %v49_v5 }
  0x36   :  { %v436_v6 = vmul.f32 %v46_v4, %v46_v4 }
  0x38   :  { %249 = vmatmul.mubr.f32.gmra.mxu0 %v16_v8  ;;  %634 = vmatmul.mubr.f32.gmra.mxu1 %v406_v10  ;;  %v48_v8 = vld [vmem:[%s3099_s0 + $0x110] sm:$0xff] }
  0x39   :  { %1756 = vmatprep.mubr.msk.f32.mxu0 %vm78_vm1, %v19_v9  ;;  %1789 = vmatprep.mubr.msk.f32.mxu1 %vm78_vm1, %v409_v11  ;;  %v51_v9 = vld [vmem:[%s3099_s0 + $0x128] sm:$0xff]  ;;  %v438_v10 = vmul.f32 %v48_v8, %v48_v8 }
  0x3a   :  { %v441_v11 = vmul.f32 %v51_v9, %v51_v9 }
  0x3c   :  { %254 = vmatmul.mubr.f32.gmra.mxu0 %v18_v12  ;;  %639 = vmatmul.mubr.f32.gmra.mxu1 %v408_v14  ;;  %v50_v12 = vld [vmem:[%s3099_s0 + $0x120] sm:$0xff] }
  0x3d   :  { %1757 = vmatprep.mubr.msk.f32.mxu0 %vm78_vm1, %v21_v13  ;;  %1790 = vmatprep.mubr.msk.f32.mxu1 %vm78_vm1, %v411_v15  ;;  %v53_v13 = vld [vmem:[%s3099_s0 + $0x138] sm:$0xff]  ;;  %v440_v14 = vmul.f32 %v50_v12, %v50_v12 }
  0x3e   :  { %v443_v15 = vmul.f32 %v53_v13, %v53_v13 }
  0x40   :  { %259 = vmatmul.mubr.f32.gmra.mxu0 %v20_v16  ;;  %644 = vmatmul.mubr.f32.gmra.mxu1 %v410_v18  ;;  %v52_v16 = vld [vmem:[%s3099_s0 + $0x130] sm:$0xff] }
  0x41   :  { %1758 = vmatprep.mubr.msk.f32.mxu0 %vm78_vm1, %v23_v17  ;;  %1791 = vmatprep.mubr.msk.f32.mxu1 %vm78_vm1, %v413_v19  ;;  %v55_v17 = vld [vmem:[%s3099_s0 + $0x148] sm:$0xff]  ;;  %v442_v18 = vmul.f32 %v52_v16, %v52_v16 }
  0x42   :  { %v445_v19 = vmul.f32 %v55_v17, %v55_v17 }
  0x44   :  { %264 = vmatmul.mubr.f32.gmra.mxu0 %v22_v20  ;;  %649 = vmatmul.mubr.f32.gmra.mxu1 %v412_v22  ;;  %v54_v20 = vld [vmem:[%s3099_s0 + $0x140] sm:$0xff] }
  0x45   :  { %1759 = vmatprep.mubr.msk.f32.mxu0 %vm78_vm1, %v25_v21  ;;  %1792 = vmatprep.mubr.msk.f32.mxu1 %vm78_vm1, %v415_v23  ;;  %v57_v21 = vld [vmem:[%s3099_s0 + $0x158] sm:$0xff]  ;;  %v444_v22 = vmul.f32 %v54_v20, %v54_v20 }
  0x46   :  { %v447_v23 = vmul.f32 %v57_v21, %v57_v21 }
  0x48   :  { %269 = vmatmul.mubr.f32.gmra.mxu0 %v24_v24  ;;  %654 = vmatmul.mubr.f32.gmra.mxu1 %v414_v26  ;;  %v56_v24 = vld [vmem:[%s3099_s0 + $0x150] sm:$0xff] }
  0x49   :  { %1760 = vmatprep.mubr.msk.f32.mxu0 %vm78_vm1, %v27_v25  ;;  %1793 = vmatprep.mubr.msk.f32.mxu1 %vm78_vm1, %v417_v27  ;;  %v59_v25 = vld [vmem:[%s3099_s0 + $0x168] sm:$0xff]  ;;  %v446_v26 = vmul.f32 %v56_v24, %v56_v24 }
  0x4a   :  { %v449_v27 = vmul.f32 %v59_v25, %v59_v25 }
  0x4c   :  { %274 = vmatmul.mubr.f32.gmra.mxu0 %v26_v28  ;;  %659 = vmatmul.mubr.f32.gmra.mxu1 %v416_v30  ;;  %v58_v28 = vld [vmem:[%s3099_s0 + $0x160] sm:$0xff] }
  0x4d   :  { %1761 = vmatprep.mubr.msk.f32.mxu0 %vm78_vm1, %v29_v29  ;;  %1794 = vmatprep.mubr.msk.f32.mxu1 %vm78_vm1, %v419_v31  ;;  %v61_v29 = vld [vmem:[%s3099_s0 + $0x178] sm:$0xff]  ;;  %v448_v30 = vmul.f32 %v58_v28, %v58_v28 }
  0x4e   :  { %v451_v31 = vmul.f32 %v61_v29, %v61_v29 }
  0x50   :  { %279 = vmatmul.mubr.f32.gmra.mxu0 %v28_v32  ;;  %664 = vmatmul.mubr.f32.gmra.mxu1 %v418_v34  ;;  %v60_v32 = vld [vmem:[%s3099_s0 + $0x170] sm:$0xff] }
  0x51   :  { %1762 = vmatprep.mubr.msk.f32.mxu0 %vm78_vm1, %v31_v33  ;;  %1795 = vmatprep.mubr.msk.f32.mxu1 %vm78_vm1, %v421_v35  ;;  %v63_v33 = vld [vmem:[%s3099_s0 + $0x188] sm:$0xff]  ;;  %v450_v34 = vmul.f32 %v60_v32, %v60_v32 }
  0x52   :  { %v453_v35 = vmul.f32 %v63_v33, %v63_v33 }
  0x54   :  { %284 = vmatmul.mubr.f32.gmra.mxu0 %v30_v36  ;;  %669 = vmatmul.mubr.f32.gmra.mxu1 %v420_v38  ;;  %v62_v36 = vld [vmem:[%s3099_s0 + $0x180] sm:$0xff]  ;;  %v1954_v38 = vmov 0  }
  0x55   :  { %1763 = vmatprep.mubr.msk.f32.mxu0 %vm78_vm1, %v33_v37  ;;  %1796 = vmatprep.mubr.msk.f32.mxu1 %vm78_vm1, %v423_v39  ;;  %v65_v37 = vld [vmem:[%s3099_s0 + $0x198] sm:$0xff]  ;;  %v452_v39 = vmul.f32 %v62_v36, %v62_v36 }
  0x56   :  { %1822 = vset.pattern.permute.xlu0 %v1954_v38  ;;  %1823 = vset.pattern.permute.xlu1 %v1954_v38 }
  0x58   :  { %289 = vmatmul.mubr.f32.gmra.mxu0 %v32_v40  ;;  %674 = vmatmul.mubr.f32.gmra.mxu1 %v422_v42  ;;  %v455_v40 = vmul.f32 %v65_v37, %v65_v37  ;;  %v67_v42 = vld [vmem:[%s3099_s0 + $0x1a8] sm:$0xff] }
  0x59   :  { %1764 = vmatprep.mubr.msk.f32.mxu0 %vm78_vm1, %v35_v41  ;;  %1797 = vmatprep.mubr.msk.f32.mxu1 %vm78_vm1, %v425_v43  ;;  %v64_v41 = vld [vmem:[%s3099_s0 + $0x190] sm:$0xff] }
  0x5a   :  { %v454_v43 = vmul.f32 %v64_v41, %v64_v41 }
  0x5c   :  { %294 = vmatmul.mubr.f32.gmra.mxu0 %v34_v44  ;;  %679 = vmatmul.mubr.f32.gmra.mxu1 %v424_v46  ;;  %v457_v44 = vmul.f32 %v67_v42, %v67_v42  ;;  %v69_v46 = vld [vmem:[%s3099_s0 + $0x1b8] sm:$0xff] }
  0x5d   :  { %1765 = vmatprep.mubr.msk.f32.mxu0 %vm78_vm1, %v37_v45  ;;  %1798 = vmatprep.mubr.msk.f32.mxu1 %vm78_vm1, %v427_v47  ;;  %v66_v45 = vld [vmem:[%s3099_s0 + $0x1a0] sm:$0xff] }
  0x5e   :  { %v456_v47 = vmul.f32 %v66_v45, %v66_v45 }
  0x60   :  { %299 = vmatmul.mubr.f32.gmra.mxu0 %v36_v48  ;;  %684 = vmatmul.mubr.f32.gmra.mxu1 %v426_v50  ;;  %v459_v48 = vmul.f32 %v69_v46, %v69_v46  ;;  %v71_v50 = vld [vmem:[%s3099_s0 + $0x1c8] sm:$0xff] }
  0x61   :  { %1766 = vmatprep.mubr.msk.f32.mxu0 %vm78_vm1, %v39_v49  ;;  %1799 = vmatprep.mubr.msk.f32.mxu1 %vm78_vm1, %v429_v51  ;;  %v68_v49 = vld [vmem:[%s3099_s0 + $0x1b0] sm:$0xff] }
  0x62   :  { %v458_v51 = vmul.f32 %v68_v49, %v68_v49 }
  0x64   :  { %304 = vmatmul.mubr.f32.gmra.mxu0 %v38_v52  ;;  %689 = vmatmul.mubr.f32.gmra.mxu1 %v428_v54  ;;  %v461_v52 = vmul.f32 %v71_v50, %v71_v50  ;;  %v73_v54 = vld [vmem:[%s3099_s0 + $0x1d8] sm:$0xff] }
  0x65   :  { %1767 = vmatprep.mubr.msk.f32.mxu0 %vm78_vm1, %v41_v53  ;;  %1800 = vmatprep.mubr.msk.f32.mxu1 %vm78_vm1, %v431_v55  ;;  %v70_v53 = vld [vmem:[%s3099_s0 + $0x1c0] sm:$0xff] }
  0x66   :  { %v460_v55 = vmul.f32 %v70_v53, %v70_v53 }
  0x68   :  { %309 = vmatmul.mubr.f32.gmra.mxu0 %v40_v56  ;;  %694 = vmatmul.mubr.f32.gmra.mxu1 %v430_v58  ;;  %v463_v56 = vmul.f32 %v73_v54, %v73_v54  ;;  %v75_v58 = vld [vmem:[%s3099_s0 + $0x1e8] sm:$0xff] }
  0x69   :  { %1768 = vmatprep.mubr.msk.f32.mxu0 %vm78_vm1, %v43_v57  ;;  %1801 = vmatprep.mubr.msk.f32.mxu1 %vm78_vm1, %v433_v59  ;;  %v72_v57 = vld [vmem:[%s3099_s0 + $0x1d0] sm:$0xff] }
  0x6a   :  { %v462_v59 = vmul.f32 %v72_v57, %v72_v57 }
  0x6c   :  { %314 = vmatmul.mubr.f32.gmra.mxu0 %v42_v60  ;;  %699 = vmatmul.mubr.f32.gmra.mxu1 %v432_v62  ;;  %v465_v60 = vmul.f32 %v75_v58, %v75_v58  ;;  %v77_v62 = vld [vmem:[%s3099_s0 + $0x1f8] sm:$0xff] }
  0x6d   :  { %1769 = vmatprep.mubr.msk.f32.mxu0 %vm78_vm1, %v45_v61  ;;  %1802 = vmatprep.mubr.msk.f32.mxu1 %vm78_vm1, %v435_v63  ;;  %v74_v61 = vld [vmem:[%s3099_s0 + $0x1e0] sm:$0xff] }
  0x6e   :  { %v464_v63 = vmul.f32 %v74_v61, %v74_v61 }
  0x70   :  { %319 = vmatmul.mubr.f32.gmra.mxu0 %v44_v0  ;;  %704 = vmatmul.mubr.f32.gmra.mxu1 %v434_v2  ;;  %v467_v0 = vmul.f32 %v77_v62, %v77_v62 }
  0x71   :  { %1770 = vmatprep.mubr.msk.f32.mxu0 %vm78_vm1, %v47_v1  ;;  %1803 = vmatprep.mubr.msk.f32.mxu1 %vm78_vm1, %v437_v3  ;;  %v76_v1 = vld [vmem:[%s3099_s0 + $0x1f0] sm:$0xff] }
  0x72   :  { %v466_v2 = vmul.f32 %v76_v1, %v76_v1 }
  0x74   :  { %324 = vmatmul.mubr.f32.gmra.mxu0 %v46_v4  ;;  %709 = vmatmul.mubr.f32.gmra.mxu1 %v436_v6 }
  0x75   :  { %1771 = vmatprep.mubr.msk.f32.mxu0 %vm78_vm1, %v49_v5  ;;  %1804 = vmatprep.mubr.msk.f32.mxu1 %vm78_vm1, %v439_v7 }
  0x78   :  { %329 = vmatmul.mubr.f32.gmra.mxu0 %v48_v8  ;;  %714 = vmatmul.mubr.f32.gmra.mxu1 %v438_v10 }
  0x79   :  { %1772 = vmatprep.mubr.msk.f32.mxu0 %vm78_vm1, %v51_v9  ;;  %1805 = vmatprep.mubr.msk.f32.mxu1 %vm78_vm1, %v441_v11 }
  0x7c   :  { %334 = vmatmul.mubr.f32.gmra.mxu0 %v50_v12  ;;  %719 = vmatmul.mubr.f32.gmra.mxu1 %v440_v14 }
  0x7d   :  { %1773 = vmatprep.mubr.msk.f32.mxu0 %vm78_vm1, %v53_v13  ;;  %1806 = vmatprep.mubr.msk.f32.mxu1 %vm78_vm1, %v443_v15 }
  0x80   :  { %339 = vmatmul.mubr.f32.gmra.mxu0 %v52_v16  ;;  %724 = vmatmul.mubr.f32.gmra.mxu1 %v442_v18 }
  0x81   :  { %1774 = vmatprep.mubr.msk.f32.mxu0 %vm78_vm1, %v55_v17  ;;  %1807 = vmatprep.mubr.msk.f32.mxu1 %vm78_vm1, %v445_v19 }
  0x84   :  { %344 = vmatmul.mubr.f32.gmra.mxu0 %v54_v20  ;;  %729 = vmatmul.mubr.f32.gmra.mxu1 %v444_v22 }
  0x85   :  { %1775 = vmatprep.mubr.msk.f32.mxu0 %vm78_vm1, %v57_v21  ;;  %1808 = vmatprep.mubr.msk.f32.mxu1 %vm78_vm1, %v447_v23 }
  0x88   :  { %349 = vmatmul.mubr.f32.gmra.mxu0 %v56_v24  ;;  %734 = vmatmul.mubr.f32.gmra.mxu1 %v446_v26 }
  0x89   :  { %1776 = vmatprep.mubr.msk.f32.mxu0 %vm78_vm1, %v59_v25  ;;  %1809 = vmatprep.mubr.msk.f32.mxu1 %vm78_vm1, %v449_v27 }
  0x8c   :  { %354 = vmatmul.mubr.f32.gmra.mxu0 %v58_v28  ;;  %739 = vmatmul.mubr.f32.gmra.mxu1 %v448_v30 }
  0x8d   :  { %1777 = vmatprep.mubr.msk.f32.mxu0 %vm78_vm1, %v61_v29  ;;  %1810 = vmatprep.mubr.msk.f32.mxu1 %vm78_vm1, %v451_v31 }
  0x90   :  { %359 = vmatmul.mubr.f32.gmra.mxu0 %v60_v32  ;;  %744 = vmatmul.mubr.f32.gmra.mxu1 %v450_v34 }
  0x91   :  { %1778 = vmatprep.mubr.msk.f32.mxu0 %vm78_vm1, %v63_v33  ;;  %1811 = vmatprep.mubr.msk.f32.mxu1 %vm78_vm1, %v453_v35 }
  0x94   :  { %364 = vmatmul.mubr.f32.gmra.mxu0 %v62_v36  ;;  %749 = vmatmul.mubr.f32.gmra.mxu1 %v452_v39 }
  0x95   :  { %1779 = vmatprep.mubr.msk.f32.mxu0 %vm78_vm1, %v65_v37  ;;  %1812 = vmatprep.mubr.msk.f32.mxu1 %vm78_vm1, %v455_v40 }
  0x98   :  { %369 = vmatmul.mubr.f32.gmra.mxu0 %v64_v41  ;;  %754 = vmatmul.mubr.f32.gmra.mxu1 %v454_v43 }
  0x99   :  { %1780 = vmatprep.mubr.msk.f32.mxu0 %vm78_vm1, %v67_v42  ;;  %1813 = vmatprep.mubr.msk.f32.mxu1 %vm78_vm1, %v457_v44 }
  0x9c   :  { %374 = vmatmul.mubr.f32.gmra.mxu0 %v66_v45  ;;  %759 = vmatmul.mubr.f32.gmra.mxu1 %v456_v47 }
  0x9d   :  { %1781 = vmatprep.mubr.msk.f32.mxu0 %vm78_vm1, %v69_v46  ;;  %1814 = vmatprep.mubr.msk.f32.mxu1 %vm78_vm1, %v459_v48 }
  0xa0   :  { %379 = vmatmul.mubr.f32.gmra.mxu0 %v68_v49  ;;  %764 = vmatmul.mubr.f32.gmra.mxu1 %v458_v51 }
  0xa1   :  { %1782 = vmatprep.mubr.msk.f32.mxu0 %vm78_vm1, %v71_v50  ;;  %1815 = vmatprep.mubr.msk.f32.mxu1 %vm78_vm1, %v461_v52 }
  0xa4   :  { %384 = vmatmul.mubr.f32.gmra.mxu0 %v70_v53  ;;  %769 = vmatmul.mubr.f32.gmra.mxu1 %v460_v55 }
  0xa5   :  { %1783 = vmatprep.mubr.msk.f32.mxu0 %vm78_vm1, %v73_v54  ;;  %1816 = vmatprep.mubr.msk.f32.mxu1 %vm78_vm1, %v463_v56 }
  0xa8   :  { %389 = vmatmul.mubr.f32.gmra.mxu0 %v72_v57  ;;  %774 = vmatmul.mubr.f32.gmra.mxu1 %v462_v59  ;;  %v949_v59 = vld [vmem:[%s3100_s1] sm:$0xff] }
  0xa9   :  { %1784 = vmatprep.mubr.msk.f32.mxu0 %vm78_vm1, %v75_v58  ;;  %1817 = vmatprep.mubr.msk.f32.mxu1 %vm78_vm1, %v465_v60 }
  0xac   :  { %394 = vmatmul.mubr.f32.gmra.mxu0 %v74_v61  ;;  %779 = vmatmul.mubr.f32.gmra.mxu1 %v464_v63 }
  0xad   :  { %1785 = vmatprep.mubr.msk.f32.mxu0 %vm78_vm1, %v77_v62  ;;  %1818 = vmatprep.mubr.msk.f32.mxu1 %vm78_vm1, %v467_v0 }
  0xb0   :  { %399 = vmatmul.mubr.f32.gmra.mxu0 %v76_v1  ;;  %784 = vmatmul.mubr.f32.gmra.mxu1 %v466_v2 }
  0xf4   :  { %v245_v3 = vpop.f32.mrf.mxu0  ;;  %v630_v4 = vpop.f32.mrf.mxu1 }
  0xf5   :  { %v2331_v5 = vmul.f32 0.0051020407, %v245_v3  ;;  %v821_v6 = vmul.f32 0.0051020407, %v630_v4 }
  0xf6   :  { %v247_v7 = vpop.f32.mrf.mxu0  ;;  %v632_v8 = vpop.f32.mrf.mxu1 }
  0xf7   :  { %v853_v9 = vmul.f32 %v2331_v5, %v2331_v5 }
  0xf8   :  { %v250_v10 = vpop.f32.mrf.mxu0  ;;  %v635_v11 = vpop.f32.mrf.mxu1 }
  0xf9   :  { %v885_v12 = vsub.f32 %v821_v6, %v853_v9  ;;  %v2335_v13 = vmul.f32 0.0051020407, %v250_v10  ;;  %v822_v14 = vmul.f32 0.0051020407, %v635_v11  ;;  %v950_v9 = vld [vmem:[%s3100_s1 + $0x8] sm:$0xff] }
  0xfa   :  { %v252_v15 = vpop.f32.mrf.mxu0  ;;  %v637_v16 = vpop.f32.mrf.mxu1 }
  0xfb   :  { %v917_v17 = vmax.f32 %v885_v12, 0.0  ;;  %v854_v18 = vmul.f32 %v2335_v13, %v2335_v13 }
  0xfc   :  { %v255_v19 = vpop.f32.mrf.mxu0  ;;  %v640_v20 = vpop.f32.mrf.mxu1 }
  0xfd   :  { %v981_v21 = vadd.f32 1e-05, %v917_v17  ;;  %v886_v22 = vsub.f32 %v822_v14, %v854_v18  ;;  %v2339_v23 = vmul.f32 0.0051020407, %v255_v19  ;;  %v823_v24 = vmul.f32 0.0051020407, %v640_v20 }
  0xfe   :  { %v257_v25 = vpop.f32.mrf.mxu0  ;;  %v642_v26 = vpop.f32.mrf.mxu1 }
  0xff   :  { %1824 = vrsqrt.f32 %v981_v21  ;;  %v918_v27 = vmax.f32 %v886_v22, 0.0  ;;  %v855_v28 = vmul.f32 %v2339_v23, %v2339_v23  ;;  %v1077_v25 = vld [vmem:[%s3101_s2] sm:$0xff]  ;;  %v951_v26 = vld [vmem:[%s3100_s1 + $0x10] sm:$0xff] }
 0x100   :  { %v260_v29 = vpop.f32.mrf.mxu0  ;;  %v645_v30 = vpop.f32.mrf.mxu1 }
 0x101   :  { %v982_v31 = vadd.f32 1e-05, %v918_v27  ;;  %v887_v32 = vsub.f32 %v823_v24, %v855_v28  ;;  %v2343_v33 = vmul.f32 0.0051020407, %v260_v29  ;;  %v824_v34 = vmul.f32 0.0051020407, %v645_v30 }
 0x102   :  { %v262_v35 = vpop.f32.mrf.mxu0  ;;  %v647_v36 = vpop.f32.mrf.mxu1 }
 0x103   :  { %1826 = vrsqrt.f32 %v982_v31  ;;  %v919_v37 = vmax.f32 %v887_v32, 0.0  ;;  %v856_v38 = vmul.f32 %v2343_v33, %v2343_v33 }
 0x104   :  { %v265_v39 = vpop.f32.mrf.mxu0  ;;  %v650_v40 = vpop.f32.mrf.mxu1 }
 0x105   :  { %v983_v41 = vadd.f32 1e-05, %v919_v37  ;;  %v888_v42 = vsub.f32 %v824_v34, %v856_v38  ;;  %v2347_v43 = vmul.f32 0.0051020407, %v265_v39  ;;  %v825_v44 = vmul.f32 0.0051020407, %v650_v40 }
 0x106   :  { %v267_v45 = vpop.f32.mrf.mxu0  ;;  %v652_v46 = vpop.f32.mrf.mxu1 }
 0x107   :  { %1828 = vrsqrt.f32 %v983_v41  ;;  %v920_v47 = vmax.f32 %v888_v42, 0.0  ;;  %v857_v48 = vmul.f32 %v2347_v43, %v2347_v43  ;;  %v1078_v41 = vld [vmem:[%s3101_s2 + $0x8] sm:$0xff]  ;;  %v1079_v42 = vld [vmem:[%s3101_s2 + $0x10] sm:$0xff] }
 0x108   :  { %v270_v49 = vpop.f32.mrf.mxu0  ;;  %v655_v50 = vpop.f32.mrf.mxu1 }
 0x109   :  { %v984_v51 = vadd.f32 1e-05, %v920_v47  ;;  %v889_v52 = vsub.f32 %v825_v44, %v857_v48  ;;  %v2351_v53 = vmul.f32 0.0051020407, %v270_v49  ;;  %v826_v54 = vmul.f32 0.0051020407, %v655_v50 }
 0x10a   :  { %v272_v55 = vpop.f32.mrf.mxu0  ;;  %v657_v56 = vpop.f32.mrf.mxu1  ;;  %v952_v44 = vld [vmem:[%s3100_s1 + $0x18] sm:$0xff] }
 0x10b   :  { %1830 = vrsqrt.f32 %v984_v51  ;;  %v921_v57 = vmax.f32 %v889_v52, 0.0  ;;  %v858_v58 = vmul.f32 %v2351_v53, %v2351_v53 }
 0x10c   :  { %v1825_v60 = vpop.eup %1824  ;;  %v275_v61 = vpop.f32.mrf.mxu0 }
 0x10d   :  { %v660_v62 = vpop.f32.mrf.mxu1  ;;  %v985_v63 = vadd.f32 1e-05, %v921_v57  ;;  %v890_v0 = vsub.f32 %v826_v54, %v858_v58  ;;  %v2358_v1 = vmul.f32 0.0051020407, %v275_v61  ;;  %v1045_v4 = vmul.f32 %v1825_v60, %v949_v59 }
 0x10e   :  { %v827_v2 = vmul.f32 0.0051020407, %v660_v62  ;;  %v277_v3 = vpop.f32.mrf.mxu0 }
 0x10f   :  { %v662_v6 = vpop.f32.mrf.mxu1  ;;  %1832 = vrsqrt.f32 %v985_v63  ;;  %v922_v7 = vmax.f32 %v890_v0, 0.0  ;;  %v859_v8 = vmul.f32 %v2358_v1, %v2358_v1  ;;  %1175 = vperm.xlu0 %1822, %v1045_v4   ;;  %v1109_v18 = vmul.f32 %v1045_v4, %v2331_v5 }
 0x110   :  { %v1827_v10 = vpop.eup %1826  ;;  %v280_v11 = vpop.f32.mrf.mxu0 }
 0x111   :  { %v665_v12 = vpop.f32.mrf.mxu1  ;;  %v986_v14 = vadd.f32 1e-05, %v922_v7  ;;  %v891_v15 = vsub.f32 %v827_v2, %v859_v8  ;;  %v2365_v16 = vmul.f32 0.0051020407, %v280_v11  ;;  %v1046_v20 = vmul.f32 %v1827_v10, %v950_v9  ;;  %v1080_v11 = vld [vmem:[%s3101_s2 + $0x18] sm:$0xff] }
 0x112   :  { %v828_v17 = vmul.f32 0.0051020407, %v665_v12  ;;  %v282_v19 = vpop.f32.mrf.mxu0  ;;  %v1141_v35 = vsub.f32 %v1077_v25, %v1109_v18  ;;  %v1081_v12 = vld [vmem:[%s3101_s2 + $0x20] sm:$0xff] }
 0x113   :  { %v667_v21 = vpop.f32.mrf.mxu1  ;;  %1834 = vrsqrt.f32 %v986_v14  ;;  %v923_v22 = vmax.f32 %v891_v15, 0.0  ;;  %v860_v24 = vmul.f32 %v2365_v16, %v2365_v16  ;;  %1180 = vperm.xlu0 %1822, %v1046_v20   ;;  %v1110_v38 = vmul.f32 %v1046_v20, %v2335_v13  ;;  %v954_v14 = vld [vmem:[%s3100_s1 + $0x28] sm:$0xff] }
 0x114   :  { %v1829_v27 = vpop.eup %1828  ;;  %v285_v28 = vpop.f32.mrf.mxu0 }
 0x115   :  { %v670_v5 = vpop.f32.mrf.mxu1  ;;  %v987_v29 = vadd.f32 1e-05, %v923_v22  ;;  %v892_v30 = vsub.f32 %v828_v17, %v860_v24  ;;  %v2376_v31 = vmul.f32 0.0051020407, %v285_v28  ;;  %v1047_v36 = vmul.f32 %v1829_v27, %v951_v26 }
 0x116   :  { %v829_v32 = vmul.f32 0.0051020407, %v670_v5  ;;  %v287_v34 = vpop.f32.mrf.mxu0  ;;  %v1142_v54 = vsub.f32 %v1078_v41, %v1110_v38 }
 0x117   :  { %v672_v37 = vpop.f32.mrf.mxu1  ;;  %1836 = vrsqrt.f32 %v987_v29  ;;  %v924_v39 = vmax.f32 %v892_v30, 0.0  ;;  %v861_v40 = vmul.f32 %v2376_v31, %v2376_v31  ;;  %1399 = vperm.xlu0 %1822, %v1141_v35   ;;  %1185 = vperm.xlu1 %1823, %v1047_v36   ;;  %v1111_v13 = vmul.f32 %v1047_v36, %v2339_v23  ;;  %v953_v23 = vld [vmem:[%s3100_s1 + $0x20] sm:$0xff]  ;;  %v955_v30 = vld [vmem:[%s3100_s1 + $0x30] sm:$0xff] }
 0x118   :  { %v1831_v45 = vpop.eup %1830  ;;  %v290_v46 = vpop.f32.mrf.mxu0 }
 0x119   :  { %v675_v47 = vpop.f32.mrf.mxu1  ;;  %v988_v48 = vadd.f32 1e-05, %v924_v39  ;;  %v893_v49 = vsub.f32 %v829_v32, %v861_v40  ;;  %v2391_v50 = vmul.f32 0.0051020407, %v290_v46  ;;  %v1143_v55 = vsub.f32 %v1079_v42, %v1111_v13  ;;  %v1082_v13 = vld [vmem:[%s3101_s2 + $0x28] sm:$0xff]  ;;  %v1083_v46 = vld [vmem:[%s3101_s2 + $0x30] sm:$0xff] }
 0x11a   :  { %v830_v51 = vmul.f32 0.0051020407, %v675_v47  ;;  %v292_v52 = vpop.f32.mrf.mxu0  ;;  %v1048_v57 = vmul.f32 %v1831_v45, %v952_v44  ;;  %v956_v47 = vld [vmem:[%s3100_s1 + $0x38] sm:$0xff] }
 0x11b   :  { %v677_v56 = vpop.f32.mrf.mxu1  ;;  %1838 = vrsqrt.f32 %v988_v48  ;;  %v925_v58 = vmax.f32 %v893_v49, 0.0  ;;  %v862_v59 = vmul.f32 %v2391_v50, %v2391_v50  ;;  %1404 = vperm.xlu1 %1823, %v1142_v54   ;;  %1409 = vperm.xlu0 %1822, %v1143_v55  }
 0x11c   :  { %v1833_v60 = vpop.eup %1832  ;;  %v295_v61 = vpop.f32.mrf.mxu0  ;;  %v1112_v8 = vmul.f32 %v1048_v57, %v2343_v33 }
 0x11d   :  { %v680_v62 = vpop.f32.mrf.mxu1  ;;  %v989_v63 = vadd.f32 1e-05, %v925_v58  ;;  %v894_v0 = vsub.f32 %v830_v51, %v862_v59  ;;  %v2398_v2 = vmul.f32 0.0051020407, %v295_v61  ;;  %v1049_v6 = vmul.f32 %v1833_v60, %v953_v23 }
 0x11e   :  { %v831_v3 = vmul.f32 0.0051020407, %v680_v62  ;;  %v297_v4 = vpop.f32.mrf.mxu0  ;;  %v1144_v25 = vsub.f32 %v1080_v11, %v1112_v8 }
 0x11f   :  { %v682_v7 = vpop.f32.mrf.mxu1  ;;  %1840 = vrsqrt.f32 %v989_v63  ;;  %v926_v9 = vmax.f32 %v894_v0, 0.0  ;;  %v863_v10 = vmul.f32 %v2398_v2, %v2398_v2  ;;  %1190 = vperm.xlu1 %1823, %v1048_v57   ;;  %1195 = vperm.xlu0 %1822, %v1049_v6   ;;  %v1113_v18 = vmul.f32 %v1049_v6, %v2347_v43  ;;  %v957_v63 = vld [vmem:[%s3100_s1 + $0x40] sm:$0xff] }
 0x120   :  { %v1835_v15 = vpop.eup %1834  ;;  %v300_v33 = vpop.f32.mrf.mxu0 }
 0x121   :  { %v685_v17 = vpop.f32.mrf.mxu1  ;;  %v990_v19 = vadd.f32 1e-05, %v926_v9  ;;  %v895_v20 = vsub.f32 %v831_v3, %v863_v10  ;;  %v2413_v21 = vmul.f32 0.0051020407, %v300_v33  ;;  %v1145_v26 = vsub.f32 %v1081_v12, %v1113_v18  ;;  %v1084_v33 = vld [vmem:[%s3101_s2 + $0x38] sm:$0xff]  ;;  %v958_v18 = vld [vmem:[%s3100_s1 + $0x48] sm:$0xff] }
 0x122   :  { %v832_v22 = vmul.f32 0.0051020407, %v685_v17  ;;  %v302_v24 = vpop.f32.mrf.mxu0  ;;  %v1050_v28 = vmul.f32 %v1835_v15, %v954_v14  ;;  %v1085_v17 = vld [vmem:[%s3101_s2 + $0x40] sm:$0xff] }
 0x123   :  { %v687_v27 = vpop.f32.mrf.mxu1  ;;  %1842 = vrsqrt.f32 %v990_v19  ;;  %v927_v5 = vmax.f32 %v895_v20, 0.0  ;;  %v864_v29 = vmul.f32 %v2413_v21, %v2413_v21  ;;  %1414 = vperm.xlu1 %1823, %v1144_v25   ;;  %1419 = vperm.xlu0 %1822, %v1145_v26  }
 0x124   :  { %v1837_v43 = vpop.eup %1836  ;;  %v305_v32 = vpop.f32.mrf.mxu0  ;;  %v1114_v42 = vmul.f32 %v1050_v28, %v2351_v53 }
 0x125   :  { %v690_v34 = vpop.f32.mrf.mxu1  ;;  %v991_v35 = vadd.f32 1e-05, %v927_v5  ;;  %v896_v36 = vsub.f32 %v832_v22, %v864_v29  ;;  %v2420_v37 = vmul.f32 0.0051020407, %v305_v32  ;;  %v1051_v40 = vmul.f32 %v1837_v43, %v955_v30 }
 0x126   :  { %v833_v38 = vmul.f32 0.0051020407, %v690_v34  ;;  %v307_v39 = vpop.f32.mrf.mxu0  ;;  %v1146_v58 = vsub.f32 %v1082_v13, %v1114_v42 }
 0x127   :  { %v692_v41 = vpop.f32.mrf.mxu1  ;;  %1844 = vrsqrt.f32 %v991_v35  ;;  %v928_v44 = vmax.f32 %v896_v36, 0.0  ;;  %v865_v45 = vmul.f32 %v2420_v37, %v2420_v37  ;;  %1200 = vperm.xlu1 %1823, %v1050_v28   ;;  %1205 = vperm.xlu0 %1822, %v1051_v40   ;;  %v1115_v51 = vmul.f32 %v1051_v40, %v2358_v1  ;;  %v959_v35 = vld [vmem:[%s3100_s1 + $0x50] sm:$0xff] }
 0x128   :  { %v1839_v48 = vpop.eup %1838  ;;  %v310_v53 = vpop.f32.mrf.mxu0 }
 0x129   :  { %v695_v49 = vpop.f32.mrf.mxu1  ;;  %v992_v52 = vadd.f32 1e-05, %v928_v44  ;;  %v897_v54 = vsub.f32 %v833_v38, %v865_v45  ;;  %v2435_v55 = vmul.f32 0.0051020407, %v310_v53  ;;  %v1147_v59 = vsub.f32 %v1083_v46, %v1115_v51  ;;  %v1086_v53 = vld [vmem:[%s3101_s2 + $0x48] sm:$0xff]  ;;  %v960_v51 = vld [vmem:[%s3100_s1 + $0x58] sm:$0xff] }
 0x12a   :  { %v834_v56 = vmul.f32 0.0051020407, %v695_v49  ;;  %v312_v57 = vpop.f32.mrf.mxu0  ;;  %v1052_v60 = vmul.f32 %v1839_v48, %v956_v47  ;;  %v1087_v49 = vld [vmem:[%s3101_s2 + $0x50] sm:$0xff] }
 0x12b   :  { %v697_v23 = vpop.f32.mrf.mxu1  ;;  %1846 = vrsqrt.f32 %v992_v52  ;;  %v929_v61 = vmax.f32 %v897_v54, 0.0  ;;  %v866_v62 = vmul.f32 %v2435_v55, %v2435_v55  ;;  %1424 = vperm.xlu1 %1823, %v1146_v58   ;;  %1429 = vperm.xlu0 %1822, %v1147_v59  }
 0x12c   :  { %v1841_v1 = vpop.eup %1840  ;;  %v315_v0 = vpop.f32.mrf.mxu0  ;;  %v1116_v12 = vmul.f32 %v1052_v60, %v2365_v16 }
 0x12d   :  { %v700_v3 = vpop.f32.mrf.mxu1  ;;  %v993_v4 = vadd.f32 1e-05, %v929_v61  ;;  %v898_v6 = vsub.f32 %v834_v56, %v866_v62  ;;  %v2442_v7 = vmul.f32 0.0051020407, %v315_v0  ;;  %v1053_v10 = vmul.f32 %v1841_v1, %v957_v63 }
 0x12e   :  { %v835_v8 = vmul.f32 0.0051020407, %v700_v3  ;;  %v317_v9 = vpop.f32.mrf.mxu0  ;;  %v1148_v5 = vsub.f32 %v1084_v33, %v1116_v12 }
 0x12f   :  { %v702_v11 = vpop.f32.mrf.mxu1  ;;  %1848 = vrsqrt.f32 %v993_v4  ;;  %v930_v14 = vmax.f32 %v898_v6, 0.0  ;;  %v867_v15 = vmul.f32 %v2442_v7, %v2442_v7  ;;  %1210 = vperm.xlu1 %1823, %v1052_v60   ;;  %1215 = vperm.xlu0 %1822, %v1053_v10   ;;  %v1117_v22 = vmul.f32 %v1053_v10, %v2376_v31  ;;  %v961_v4 = vld [vmem:[%s3100_s1 + $0x60] sm:$0xff] }
 0x130   :  { %v1843_v19 = vpop.eup %1842  ;;  %v320_v16 = vpop.f32.mrf.mxu0 }
 0x131   :  { %v705_v20 = vpop.f32.mrf.mxu1  ;;  %v994_v24 = vadd.f32 1e-05, %v930_v14  ;;  %v899_v25 = vsub.f32 %v835_v8, %v867_v15  ;;  %v2457_v26 = vmul.f32 0.0051020407, %v320_v16  ;;  %v1149_v29 = vsub.f32 %v1085_v17, %v1117_v22  ;;  %v1088_v16 = vld [vmem:[%s3101_s2 + $0x58] sm:$0xff]  ;;  %v962_v22 = vld [vmem:[%s3100_s1 + $0x68] sm:$0xff] }
 0x132   :  { %v836_v27 = vmul.f32 0.0051020407, %v705_v20  ;;  %v322_v28 = vpop.f32.mrf.mxu0  ;;  %v1054_v43 = vmul.f32 %v1843_v19, %v958_v18  ;;  %v1089_v20 = vld [vmem:[%s3101_s2 + $0x60] sm:$0xff] }
 0x133   :  { %v707_v30 = vpop.f32.mrf.mxu1  ;;  %1850 = vrsqrt.f32 %v994_v24  ;;  %v931_v32 = vmax.f32 %v899_v25, 0.0  ;;  %v868_v34 = vmul.f32 %v2457_v26, %v2457_v26  ;;  %1434 = vperm.xlu1 %1823, %v1148_v5   ;;  %1439 = vperm.xlu0 %1822, %v1149_v29  }
 0x134   :  { %v1845_v31 = vpop.eup %1844  ;;  %v325_v36 = vpop.f32.mrf.mxu0  ;;  %v1118_v46 = vmul.f32 %v1054_v43, %v2391_v50 }
 0x135   :  { %v710_v38 = vpop.f32.mrf.mxu1  ;;  %v995_v39 = vadd.f32 1e-05, %v931_v32  ;;  %v900_v40 = vsub.f32 %v836_v27, %v868_v34  ;;  %v2464_v41 = vmul.f32 0.0051020407, %v325_v36  ;;  %v1055_v45 = vmul.f32 %v1845_v31, %v959_v35 }
 0x136   :  { %v837_v42 = vmul.f32 0.0051020407, %v710_v38  ;;  %v327_v44 = vpop.f32.mrf.mxu0  ;;  %v1150_v61 = vsub.f32 %v1086_v53, %v1118_v46 }
 0x137   :  { %v712_v13 = vpop.f32.mrf.mxu1  ;;  %1852 = vrsqrt.f32 %v995_v39  ;;  %v932_v47 = vmax.f32 %v900_v40, 0.0  ;;  %v869_v48 = vmul.f32 %v2464_v41, %v2464_v41  ;;  %1220 = vperm.xlu1 %1823, %v1054_v43   ;;  %1225 = vperm.xlu0 %1822, %v1055_v45   ;;  %v1119_v56 = vmul.f32 %v1055_v45, %v2398_v2  ;;  %v963_v39 = vld [vmem:[%s3100_s1 + $0x70] sm:$0xff] }
 0x138   :  { %v1847_v52 = vpop.eup %1846  ;;  %v330_v50 = vpop.f32.mrf.mxu0 }
 0x139   :  { %v715_v54 = vpop.f32.mrf.mxu1  ;;  %v996_v57 = vadd.f32 1e-05, %v932_v47  ;;  %v901_v58 = vsub.f32 %v837_v42, %v869_v48  ;;  %v2479_v59 = vmul.f32 0.0051020407, %v330_v50  ;;  %v1151_v62 = vsub.f32 %v1087_v49, %v1119_v56  ;;  %v1090_v50 = vld [vmem:[%s3101_s2 + $0x68] sm:$0xff]  ;;  %v964_v56 = vld [vmem:[%s3100_s1 + $0x78] sm:$0xff] }
 0x13a   :  { %v838_v23 = vmul.f32 0.0051020407, %v715_v54  ;;  %v332_v60 = vpop.f32.mrf.mxu0  ;;  %v1056_v1 = vmul.f32 %v1847_v52, %v960_v51  ;;  %v1091_v54 = vld [vmem:[%s3101_s2 + $0x70] sm:$0xff] }
 0x13b   :  { %v717_v63 = vpop.f32.mrf.mxu1  ;;  %1854 = vrsqrt.f32 %v996_v57  ;;  %v933_v0 = vmax.f32 %v901_v58, 0.0  ;;  %v870_v3 = vmul.f32 %v2479_v59, %v2479_v59  ;;  %1444 = vperm.xlu1 %1823, %v1150_v61   ;;  %1449 = vperm.xlu0 %1822, %v1151_v62  }
 0x13c   :  { %v1849_v2 = vpop.eup %1848  ;;  %v335_v6 = vpop.f32.mrf.mxu0  ;;  %v1120_v17 = vmul.f32 %v1056_v1, %v2413_v21 }
 0x13d   :  { %v720_v8 = vpop.f32.mrf.mxu1  ;;  %v997_v9 = vadd.f32 1e-05, %v933_v0  ;;  %v902_v10 = vsub.f32 %v838_v23, %v870_v3  ;;  %v2486_v11 = vmul.f32 0.0051020407, %v335_v6  ;;  %v1057_v15 = vmul.f32 %v1849_v2, %v961_v4 }
 0x13e   :  { %v839_v12 = vmul.f32 0.0051020407, %v720_v8  ;;  %v337_v14 = vpop.f32.mrf.mxu0  ;;  %v1152_v32 = vsub.f32 %v1088_v16, %v1120_v17 }
 0x13f   :  { %v722_v33 = vpop.f32.mrf.mxu1  ;;  %1856 = vrsqrt.f32 %v997_v9  ;;  %v934_v18 = vmax.f32 %v902_v10, 0.0  ;;  %v871_v19 = vmul.f32 %v2486_v11, %v2486_v11  ;;  %1230 = vperm.xlu1 %1823, %v1056_v1   ;;  %1235 = vperm.xlu0 %1822, %v1057_v15   ;;  %v1121_v27 = vmul.f32 %v1057_v15, %v2420_v37  ;;  %v965_v9 = vld [vmem:[%s3100_s1 + $0x80] sm:$0xff] }
 0x140   :  { %v1851_v24 = vpop.eup %1850  ;;  %v340_v21 = vpop.f32.mrf.mxu0 }
 0x141   :  { %v725_v25 = vpop.f32.mrf.mxu1  ;;  %v998_v28 = vadd.f32 1e-05, %v934_v18  ;;  %v903_v5 = vsub.f32 %v839_v12, %v871_v19  ;;  %v2501_v29 = vmul.f32 0.0051020407, %v340_v21  ;;  %v1153_v34 = vsub.f32 %v1089_v20, %v1121_v27  ;;  %v1092_v21 = vld [vmem:[%s3101_s2 + $0x78] sm:$0xff]  ;;  %v966_v27 = vld [vmem:[%s3100_s1 + $0x88] sm:$0xff] }
 0x142   :  { %v840_v30 = vmul.f32 0.0051020407, %v725_v25  ;;  %v342_v43 = vpop.f32.mrf.mxu0  ;;  %v1058_v31 = vmul.f32 %v1851_v24, %v962_v22  ;;  %v1093_v25 = vld [vmem:[%s3101_s2 + $0x80] sm:$0xff] }
 0x143   :  { %v727_v35 = vpop.f32.mrf.mxu1  ;;  %1858 = vrsqrt.f32 %v998_v28  ;;  %v935_v36 = vmax.f32 %v903_v5, 0.0  ;;  %v872_v38 = vmul.f32 %v2501_v29, %v2501_v29  ;;  %1454 = vperm.xlu1 %1823, %v1152_v32   ;;  %1459 = vperm.xlu0 %1822, %v1153_v34  }
 0x144   :  { %v1853_v37 = vpop.eup %1852  ;;  %v345_v40 = vpop.f32.mrf.mxu0  ;;  %v1122_v49 = vmul.f32 %v1058_v31, %v2435_v55 }
 0x145   :  { %v730_v42 = vpop.f32.mrf.mxu1  ;;  %v999_v44 = vadd.f32 1e-05, %v935_v36  ;;  %v904_v45 = vsub.f32 %v840_v30, %v872_v38  ;;  %v2508_v13 = vmul.f32 0.0051020407, %v345_v40  ;;  %v1059_v48 = vmul.f32 %v1853_v37, %v963_v39 }
 0x146   :  { %v841_v46 = vmul.f32 0.0051020407, %v730_v42  ;;  %v347_v47 = vpop.f32.mrf.mxu0  ;;  %v1154_v0 = vsub.f32 %v1090_v50, %v1122_v49 }
 0x147   :  { %v732_v53 = vpop.f32.mrf.mxu1  ;;  %1860 = vrsqrt.f32 %v999_v44  ;;  %v936_v51 = vmax.f32 %v904_v45, 0.0  ;;  %v873_v52 = vmul.f32 %v2508_v13, %v2508_v13  ;;  %1240 = vperm.xlu1 %1823, %v1058_v31   ;;  %1245 = vperm.xlu0 %1822, %v1059_v48   ;;  %v1123_v23 = vmul.f32 %v1059_v48, %v2442_v7  ;;  %v967_v44 = vld [vmem:[%s3100_s1 + $0x90] sm:$0xff] }
 0x148   :  { %v1855_v57 = vpop.eup %1854  ;;  %v350_v55 = vpop.f32.mrf.mxu0 }
 0x149   :  { %v735_v58 = vpop.f32.mrf.mxu1  ;;  %v1000_v60 = vadd.f32 1e-05, %v936_v51  ;;  %v905_v61 = vsub.f32 %v841_v46, %v873_v52  ;;  %v2523_v62 = vmul.f32 0.0051020407, %v350_v55  ;;  %v1155_v3 = vsub.f32 %v1091_v54, %v1123_v23  ;;  %v1094_v55 = vld [vmem:[%s3101_s2 + $0x88] sm:$0xff]  ;;  %v968_v23 = vld [vmem:[%s3100_s1 + $0x98] sm:$0xff] }
 0x14a   :  { %v842_v63 = vmul.f32 0.0051020407, %v735_v58  ;;  %v352_v1 = vpop.f32.mrf.mxu0  ;;  %v1060_v2 = vmul.f32 %v1855_v57, %v964_v56  ;;  %v1095_v58 = vld [vmem:[%s3101_s2 + $0x90] sm:$0xff] }
 0x14b   :  { %v737_v4 = vpop.f32.mrf.mxu1  ;;  %1862 = vrsqrt.f32 %v1000_v60  ;;  %v937_v6 = vmax.f32 %v905_v61, 0.0  ;;  %v874_v8 = vmul.f32 %v2523_v62, %v2523_v62  ;;  %1464 = vperm.xlu1 %1823, %v1154_v0   ;;  %1469 = vperm.xlu0 %1822, %v1155_v3  }
 0x14c   :  { %v1857_v7 = vpop.eup %1856  ;;  %v355_v10 = vpop.f32.mrf.mxu0  ;;  %v1124_v20 = vmul.f32 %v1060_v2, %v2457_v26 }
 0x14d   :  { %v740_v12 = vpop.f32.mrf.mxu1  ;;  %v1001_v14 = vadd.f32 1e-05, %v937_v6  ;;  %v906_v15 = vsub.f32 %v842_v63, %v874_v8  ;;  %v2530_v33 = vmul.f32 0.0051020407, %v355_v10  ;;  %v1061_v19 = vmul.f32 %v1857_v7, %v965_v9 }
 0x14e   :  { %v843_v17 = vmul.f32 0.0051020407, %v740_v12  ;;  %v357_v18 = vpop.f32.mrf.mxu0  ;;  %v1156_v36 = vsub.f32 %v1092_v21, %v1124_v20 }
 0x14f   :  { %v742_v16 = vpop.f32.mrf.mxu1  ;;  %1864 = vrsqrt.f32 %v1001_v14  ;;  %v938_v22 = vmax.f32 %v906_v15, 0.0  ;;  %v875_v24 = vmul.f32 %v2530_v33, %v2530_v33  ;;  %1250 = vperm.xlu1 %1823, %v1060_v2   ;;  %1255 = vperm.xlu0 %1822, %v1061_v19   ;;  %v1125_v30 = vmul.f32 %v1061_v19, %v2464_v41  ;;  %v969_v14 = vld [vmem:[%s3100_s1 + $0xa0] sm:$0xff] }
 0x150   :  { %v1859_v28 = vpop.eup %1858  ;;  %v360_v26 = vpop.f32.mrf.mxu0 }
 0x151   :  { %v745_v5 = vpop.f32.mrf.mxu1  ;;  %v1002_v43 = vadd.f32 1e-05, %v938_v22  ;;  %v907_v32 = vsub.f32 %v843_v17, %v875_v24  ;;  %v2545_v34 = vmul.f32 0.0051020407, %v360_v26  ;;  %v1157_v38 = vsub.f32 %v1093_v25, %v1125_v30  ;;  %v1096_v26 = vld [vmem:[%s3101_s2 + $0x98] sm:$0xff]  ;;  %v970_v30 = vld [vmem:[%s3100_s1 + $0xa8] sm:$0xff] }
 0x152   :  { %v844_v35 = vmul.f32 0.0051020407, %v745_v5  ;;  %v362_v31 = vpop.f32.mrf.mxu0  ;;  %v1062_v37 = vmul.f32 %v1859_v28, %v966_v27  ;;  %v1097_v5 = vld [vmem:[%s3101_s2 + $0xa0] sm:$0xff] }
 0x153   :  { %v747_v39 = vpop.f32.mrf.mxu1  ;;  %1866 = vrsqrt.f32 %v1002_v43  ;;  %v939_v40 = vmax.f32 %v907_v32, 0.0  ;;  %v876_v42 = vmul.f32 %v2545_v34, %v2545_v34  ;;  %1474 = vperm.xlu1 %1823, %v1156_v36   ;;  %1479 = vperm.xlu0 %1822, %v1157_v38  }
 0x154   :  { %v1861_v41 = vpop.eup %1860  ;;  %v365_v45 = vpop.f32.mrf.mxu0  ;;  %v1126_v54 = vmul.f32 %v1062_v37, %v2479_v59 }
 0x155   :  { %v750_v46 = vpop.f32.mrf.mxu1  ;;  %v1003_v47 = vadd.f32 1e-05, %v939_v40  ;;  %v908_v48 = vsub.f32 %v844_v35, %v876_v42  ;;  %v2552_v53 = vmul.f32 0.0051020407, %v365_v45  ;;  %v1063_v52 = vmul.f32 %v1861_v41, %v967_v44 }
 0x156   :  { %v845_v49 = vmul.f32 0.0051020407, %v750_v46  ;;  %v367_v51 = vpop.f32.mrf.mxu0  ;;  %v1158_v6 = vsub.f32 %v1094_v55, %v1126_v54 }
 0x157   :  { %v752_v50 = vpop.f32.mrf.mxu1  ;;  %1868 = vrsqrt.f32 %v1003_v47  ;;  %v940_v56 = vmax.f32 %v908_v48, 0.0  ;;  %v877_v57 = vmul.f32 %v2552_v53, %v2552_v53  ;;  %1260 = vperm.xlu1 %1823, %v1062_v37   ;;  %1265 = vperm.xlu0 %1822, %v1063_v52   ;;  %v1127_v63 = vmul.f32 %v1063_v52, %v2486_v11  ;;  %v971_v47 = vld [vmem:[%s3100_s1 + $0xb0] sm:$0xff] }
 0x158   :  { %v1863_v60 = vpop.eup %1862  ;;  %v370_v59 = vpop.f32.mrf.mxu0 }
 0x159   :  { %v755_v61 = vpop.f32.mrf.mxu1  ;;  %v1004_v1 = vadd.f32 1e-05, %v940_v56  ;;  %v909_v0 = vsub.f32 %v845_v49, %v877_v57  ;;  %v2567_v3 = vmul.f32 0.0051020407, %v370_v59  ;;  %v1159_v8 = vsub.f32 %v1095_v58, %v1127_v63  ;;  %v1098_v59 = vld [vmem:[%s3101_s2 + $0xa8] sm:$0xff]  ;;  %v972_v63 = vld [vmem:[%s3100_s1 + $0xb8] sm:$0xff] }
 0x15a   :  { %v846_v4 = vmul.f32 0.0051020407, %v755_v61  ;;  %v372_v2 = vpop.f32.mrf.mxu0  ;;  %v1064_v7 = vmul.f32 %v1863_v60, %v968_v23  ;;  %v1099_v61 = vld [vmem:[%s3101_s2 + $0xb0] sm:$0xff] }
 0x15b   :  { %v757_v9 = vpop.f32.mrf.mxu1  ;;  %1870 = vrsqrt.f32 %v1004_v1  ;;  %v941_v10 = vmax.f32 %v909_v0, 0.0  ;;  %v878_v12 = vmul.f32 %v2567_v3, %v2567_v3  ;;  %1484 = vperm.xlu1 %1823, %v1158_v6   ;;  %1489 = vperm.xlu0 %1822, %v1159_v8  }
 0x15c   :  { %v1865_v11 = vpop.eup %1864  ;;  %v375_v15 = vpop.f32.mrf.mxu0  ;;  %v1128_v25 = vmul.f32 %v1064_v7, %v2501_v29 }
 0x15d   :  { %v760_v17 = vpop.f32.mrf.mxu1  ;;  %v1005_v18 = vadd.f32 1e-05, %v941_v10  ;;  %v910_v19 = vsub.f32 %v846_v4, %v878_v12  ;;  %v2574_v16 = vmul.f32 0.0051020407, %v375_v15  ;;  %v1065_v24 = vmul.f32 %v1865_v11, %v969_v14 }
 0x15e   :  { %v847_v20 = vmul.f32 0.0051020407, %v760_v17  ;;  %v377_v22 = vpop.f32.mrf.mxu0  ;;  %v1160_v40 = vsub.f32 %v1096_v26, %v1128_v25 }
 0x15f   :  { %v762_v21 = vpop.f32.mrf.mxu1  ;;  %1872 = vrsqrt.f32 %v1005_v18  ;;  %v942_v27 = vmax.f32 %v910_v19, 0.0  ;;  %v879_v28 = vmul.f32 %v2574_v16, %v2574_v16  ;;  %1270 = vperm.xlu1 %1823, %v1064_v7   ;;  %1275 = vperm.xlu0 %1822, %v1065_v24   ;;  %v1129_v35 = vmul.f32 %v1065_v24, %v2508_v13  ;;  %v973_v18 = vld [vmem:[%s3100_s1 + $0xc0] sm:$0xff] }
 0x160   :  { %v1867_v43 = vpop.eup %1866  ;;  %v380_v29 = vpop.f32.mrf.mxu0 }
 0x161   :  { %v765_v32 = vpop.f32.mrf.mxu1  ;;  %v1006_v31 = vadd.f32 1e-05, %v942_v27  ;;  %v911_v36 = vsub.f32 %v847_v20, %v879_v28  ;;  %v2589_v38 = vmul.f32 0.0051020407, %v380_v29  ;;  %v1161_v42 = vsub.f32 %v1097_v5, %v1129_v35  ;;  %v1100_v29 = vld [vmem:[%s3101_s2 + $0xb8] sm:$0xff]  ;;  %v974_v35 = vld [vmem:[%s3100_s1 + $0xc8] sm:$0xff] }
 0x162   :  { %v848_v39 = vmul.f32 0.0051020407, %v765_v32  ;;  %v382_v37 = vpop.f32.mrf.mxu0  ;;  %v1066_v41 = vmul.f32 %v1867_v43, %v970_v30  ;;  %v1101_v32 = vld [vmem:[%s3101_s2 + $0xc0] sm:$0xff] }
 0x163   :  { %v767_v44 = vpop.f32.mrf.mxu1  ;;  %1874 = vrsqrt.f32 %v1006_v31  ;;  %v943_v45 = vmax.f32 %v911_v36, 0.0  ;;  %v880_v46 = vmul.f32 %v2589_v38, %v2589_v38  ;;  %1494 = vperm.xlu1 %1823, %v1160_v40   ;;  %1499 = vperm.xlu0 %1822, %v1161_v42  }
 0x164   :  { %v1869_v13 = vpop.eup %1868  ;;  %v385_v48 = vpop.f32.mrf.mxu0  ;;  %v1130_v58 = vmul.f32 %v1066_v41, %v2523_v62 }
 0x165   :  { %v770_v49 = vpop.f32.mrf.mxu1  ;;  %v1007_v51 = vadd.f32 1e-05, %v943_v45  ;;  %v912_v52 = vsub.f32 %v848_v39, %v880_v46  ;;  %v2596_v50 = vmul.f32 0.0051020407, %v385_v48  ;;  %v1067_v57 = vmul.f32 %v1869_v13, %v971_v47  ;;  %v975_v48 = vld [vmem:[%s3100_s1 + $0xd0] sm:$0xff] }
 0x166   :  { %v849_v54 = vmul.f32 0.0051020407, %v770_v49  ;;  %v387_v56 = vpop.f32.mrf.mxu0  ;;  %v1162_v10 = vsub.f32 %v1098_v59, %v1130_v58  ;;  %v976_v59 = vld [vmem:[%s3100_s1 + $0xd8] sm:$0xff] }
 0x167   :  { %v772_v55 = vpop.f32.mrf.mxu1  ;;  %1876 = vrsqrt.f32 %v1007_v51  ;;  %v944_v23 = vmax.f32 %v912_v52, 0.0  ;;  %v881_v60 = vmul.f32 %v2596_v50, %v2596_v50  ;;  %1280 = vperm.xlu1 %1823, %v1066_v41   ;;  %1285 = vperm.xlu0 %1822, %v1067_v57   ;;  %v1131_v4 = vmul.f32 %v1067_v57, %v2530_v33 }
 0x168   :  { %v1871_v1 = vpop.eup %1870  ;;  %v390_v62 = vpop.f32.mrf.mxu0  ;;  %v1103_v55 = vld [vmem:[%s3101_s2 + $0xd0] sm:$0xff] }
 0x169   :  { %v775_v0 = vpop.f32.mrf.mxu1  ;;  %v1008_v2 = vadd.f32 1e-05, %v944_v23  ;;  %v913_v6 = vsub.f32 %v849_v54, %v881_v60  ;;  %v2611_v8 = vmul.f32 0.0051020407, %v390_v62  ;;  %v1163_v12 = vsub.f32 %v1099_v61, %v1131_v4  ;;  %v1102_v23 = vld [vmem:[%s3101_s2 + $0xc8] sm:$0xff] }
 0x16a   :  { %v850_v9 = vmul.f32 0.0051020407, %v775_v0  ;;  %v392_v7 = vpop.f32.mrf.mxu0  ;;  %v1068_v11 = vmul.f32 %v1871_v1, %v972_v63  ;;  %v977_v0 = vld [vmem:[%s3100_s1 + $0xe0] sm:$0xff] }
 0x16b   :  { %v777_v14 = vpop.f32.mrf.mxu1  ;;  %1878 = vrsqrt.f32 %v1008_v2  ;;  %v945_v15 = vmax.f32 %v913_v6, 0.0  ;;  %v882_v17 = vmul.f32 %v2611_v8, %v2611_v8  ;;  %1504 = vperm.xlu1 %1823, %v1162_v10   ;;  %1509 = vperm.xlu0 %1822, %v1163_v12   ;;  %v1105_v6 = vld [vmem:[%s3101_s2 + $0xe0] sm:$0xff]  ;;  %v978_v10 = vld [vmem:[%s3100_s1 + $0xe8] sm:$0xff] }
 0x16c   :  { %v1873_v33 = vpop.eup %1872  ;;  %v395_v19 = vpop.f32.mrf.mxu0  ;;  %v1132_v5 = vmul.f32 %v1068_v11, %v2545_v34 }
 0x16d   :  { %v780_v20 = vpop.f32.mrf.mxu1  ;;  %v1009_v22 = vadd.f32 1e-05, %v945_v15  ;;  %v914_v24 = vsub.f32 %v850_v9, %v882_v17  ;;  %v2618_v21 = vmul.f32 0.0051020407, %v395_v19  ;;  %v1069_v28 = vmul.f32 %v1873_v33, %v973_v18  ;;  %v1104_v9 = vld [vmem:[%s3101_s2 + $0xd8] sm:$0xff]  ;;  %v979_v15 = vld [vmem:[%s3100_s1 + $0xf0] sm:$0xff] }
 0x16e   :  { %v851_v25 = vmul.f32 0.0051020407, %v780_v20  ;;  %v397_v27 = vpop.f32.mrf.mxu0  ;;  %v1164_v41 = vsub.f32 %v1100_v29, %v1132_v5  ;;  %v1107_v33 = vld [vmem:[%s3101_s2 + $0xf0] sm:$0xff]  ;;  %v1106_v19 = vld [vmem:[%s3101_s2 + $0xe8] sm:$0xff] }
 0x16f   :  { %v782_v26 = vpop.f32.mrf.mxu1  ;;  %1880 = vrsqrt.f32 %v1009_v22  ;;  %v946_v30 = vmax.f32 %v914_v24, 0.0  ;;  %v883_v43 = vmul.f32 %v2618_v21, %v2618_v21  ;;  %1290 = vperm.xlu1 %1823, %v1068_v11   ;;  %1295 = vperm.xlu0 %1822, %v1069_v28   ;;  %v1133_v39 = vmul.f32 %v1069_v28, %v2552_v53  ;;  %v980_v22 = vld [vmem:[%s3100_s1 + $0xf8] sm:$0xff]  ;;  %v1889_v29 = vld [vmem:[%s3099_s0 + $0x8] sm:$0xff] }
 0x170   :  { %v1875_v31 = vpop.eup %1874  ;;  %v400_v34 = vpop.f32.mrf.mxu0 }
 0x171   :  { %v785_v36 = vpop.f32.mrf.mxu1  ;;  %v1010_v37 = vadd.f32 1e-05, %v946_v30  ;;  %v915_v40 = vsub.f32 %v851_v25, %v883_v43  ;;  %v2633_v42 = vmul.f32 0.0051020407, %v400_v34  ;;  %v1165_v45 = vsub.f32 %v1101_v32, %v1133_v39  ;;  %v1888_v30 = vld [vmem:[%s3099_s0] sm:$0xff] }
 0x172   :  { %v852_v44 = vmul.f32 0.0051020407, %v785_v36  ;;  %v402_v46 = vpop.f32.mrf.mxu0  ;;  %v1070_v13 = vmul.f32 %v1875_v31, %v974_v35 }
 0x173   :  { %v787_v47 = vpop.f32.mrf.mxu1  ;;  %1882 = vrsqrt.f32 %v1010_v37  ;;  %v947_v49 = vmax.f32 %v915_v40, 0.0  ;;  %v884_v51 = vmul.f32 %v2633_v42, %v2633_v42  ;;  %1514 = vperm.xlu1 %1823, %v1164_v41   ;;  %1519 = vperm.xlu0 %1822, %v1165_v45   ;;  %v1890_v37 = vld [vmem:[%s3099_s0 + $0x10] sm:$0xff]  ;;  %v1892_v46 = vld [vmem:[%s3099_s0 + $0x20] sm:$0xff] }
 0x174   :  { %v1877_v53 = vpop.eup %1876  ;;  %v1134_v57 = vmul.f32 %v1070_v13, %v2567_v3 }
 0x175   :  { %v1011_v52 = vadd.f32 1e-05, %v947_v49  ;;  %v916_v54 = vsub.f32 %v852_v44, %v884_v51  ;;  %v1071_v56 = vmul.f32 %v1877_v53, %v975_v48 }
 0x176   :  { %v1166_v1 = vsub.f32 %v1102_v23, %v1134_v57 }
 0x177   :  { %1884 = vrsqrt.f32 %v1011_v52  ;;  %v948_v58 = vmax.f32 %v916_v54, 0.0  ;;  %v1135_v60 = vmul.f32 %v1071_v56, %v2574_v16  ;;  %1300 = vperm.xlu1 %1823, %v1070_v13   ;;  %1305 = vperm.xlu0 %1822, %v1071_v56   ;;  %v1893_v13 = vld [vmem:[%s3099_s0 + $0x28] sm:$0xff] }
 0x178   :  { %v1879_v61 = vpop.eup %1878 }
 0x179   :  { %v1012_v3 = vadd.f32 1e-05, %v948_v58  ;;  %v1167_v63 = vsub.f32 %v1103_v55, %v1135_v60  ;;  %v1072_v62 = vmul.f32 %v1879_v61, %v976_v59  ;;  %v1894_v61 = vld [vmem:[%s3099_s0 + $0x30] sm:$0xff] }
 0x17b   :  { %1886 = vrsqrt.f32 %v1012_v3  ;;  %1524 = vperm.xlu1 %1823, %v1166_v1   ;;  %1529 = vperm.xlu0 %1822, %v1167_v63   ;;  %v1136_v2 = vmul.f32 %v1072_v62, %v2589_v38  ;;  %v1895_v63 = vld [vmem:[%s3099_s0 + $0x38] sm:$0xff] }
 0x17c   :  { %v1881_v4 = vpop.eup %1880 }
 0x17d   :  { %v1073_v16 = vmul.f32 %v1881_v4, %v977_v0  ;;  %v1168_v11 = vsub.f32 %v1104_v9, %v1136_v2  ;;  %v1897_v4 = vld [vmem:[%s3099_s0 + $0x48] sm:$0xff] }
 0x17f   :  { %v1137_v7 = vmul.f32 %v1073_v16, %v2596_v50  ;;  %1310 = vperm.xlu1 %1823, %v1072_v62   ;;  %1315 = vperm.xlu0 %1822, %v1073_v16   ;;  %v1896_v62 = vld [vmem:[%s3099_s0 + $0x40] sm:$0xff] }
 0x180   :  { %v1883_v12 = vpop.eup %1882 }
 0x181   :  { %v1169_v14 = vsub.f32 %v1105_v6, %v1137_v7  ;;  %v1074_v38 = vmul.f32 %v1883_v12, %v978_v10 }
 0x183   :  { %1534 = vperm.xlu1 %1823, %v1168_v11   ;;  %1539 = vperm.xlu0 %1822, %v1169_v14   ;;  %v1138_v50 = vmul.f32 %v1074_v38, %v2611_v8 }
 0x184   :  { %v1885_v17 = vpop.eup %1884 }
 0x185   :  { %v1075_v18 = vmul.f32 %v1885_v17, %v979_v15  ;;  %v1170_v27 = vsub.f32 %v1106_v19, %v1138_v50  ;;  %v1898_v50 = vld [vmem:[%s3099_s0 + $0x50] sm:$0xff]  ;;  %v1899_v19 = vld [vmem:[%s3099_s0 + $0x58] sm:$0xff] }
 0x187   :  { %v1139_v20 = vmul.f32 %v1075_v18, %v2618_v21  ;;  %1320 = vperm.xlu1 %1823, %v1074_v38   ;;  %1325 = vperm.xlu0 %1822, %v1075_v18   ;;  %v1108_v21 = vld [vmem:[%s3101_s2 + $0xf8] sm:$0xff] }
 0x188   :  { %v1887_v24 = vpop.eup %1886 }
 0x189   :  { %v1171_v25 = vsub.f32 %v1107_v33, %v1139_v20  ;;  %v1076_v8 = vmul.f32 %v1887_v24, %v980_v22  ;;  %v1900_v22 = vld [vmem:[%s3099_s0 + $0x60] sm:$0xff] }
 0x18a   :  { %v1176_v28 = vpop.permute.xlu0 %1175 }
 0x18b   :  { %1544 = vperm.xlu1 %1823, %v1170_v27   ;;  %1549 = vperm.xlu0 %1822, %v1171_v25   ;;  %v1140_v26 = vmul.f32 %v1076_v8, %v2633_v42  ;;  %v1333_v43 = vmul.f32 %v1888_v30, %v1176_v28  ;;  %v1334_v32 = vmul.f32 %v1889_v29, %v1176_v28  ;;  %v1891_v42 = vld [vmem:[%s3099_s0 + $0x18] sm:$0xff]  ;;  %v1901_v25 = vld [vmem:[%s3099_s0 + $0x68] sm:$0xff] }
 0x18d   :  { %v1172_v35 = vsub.f32 %v1108_v21, %v1140_v26 }
 0x18e   :  { %v1181_v5 = vpop.permute.xlu0 %1180 }
 0x18f   :  { %1330 = vperm.xlu1 %1823, %v1076_v8   ;;  %v1335_v40 = vmul.f32 %v1890_v37, %v1181_v5  ;;  %v1336_v44 = vmul.f32 %v1891_v42, %v1181_v5  ;;  %v1903_v37 = vld [vmem:[%s3099_s0 + $0x78] sm:$0xff]  ;;  %v1904_v42 = vld [vmem:[%s3099_s0 + $0x80] sm:$0xff] }
 0x192   :  { %v1400_v31 = vpop.permute.xlu0 %1399  ;;  %v1186_v34 = vpop.permute.xlu1 %1185 }
 0x193   :  { %v1557_v36 = vadd.f32 %v1400_v31, %v1333_v43  ;;  %v1558_v39 = vadd.f32 %v1400_v31, %v1334_v32  ;;  %1554 = vperm.xlu1 %1823, %v1172_v35   ;;  %v1337_v47 = vmul.f32 %v1892_v46, %v1186_v34  ;;  %v1338_v48 = vmul.f32 %v1893_v13, %v1186_v34 }
 0x195   :  { %v1621_v41 = vmax.f32 %v1557_v36, 0.0  ;;  %v1622_v45 = vmax.f32 %v1558_v39, 0.0  ;;  %v1902_v36 = vld [vmem:[%s3099_s0 + $0x70] sm:$0xff] }
 0x196   :  { %v1405_v49 = vpop.permute.xlu1 %1404  ;;  %v1410_v51 = vpop.permute.xlu0 %1409 }
 0x197   :  { %1685 = vst [vmem:[%s3102_s3] sm:$0xff] %v1621_v41  ;;  %1686 = vst.msk [vmem:[%s3102_s3 + $0x8] sm:$0xff] %vm78_vm1, %v1622_v45  ;;  %v1559_v53 = vadd.f32 %v1405_v49, %v1335_v40  ;;  %v1560_v52 = vadd.f32 %v1405_v49, %v1336_v44  ;;  %v1561_v54 = vadd.f32 %v1410_v51, %v1337_v47  ;;  %v1905_v41 = vld [vmem:[%s3099_s0 + $0x88] sm:$0xff] }
 0x198   :  { %v1562_v56 = vadd.f32 %v1410_v51, %v1338_v48 }
 0x199   :  { %v1623_v57 = vmax.f32 %v1559_v53, 0.0  ;;  %v1624_v55 = vmax.f32 %v1560_v52, 0.0  ;;  %v1625_v58 = vmax.f32 %v1561_v54, 0.0 }
 0x19a   :  { %v1626_v23 = vmax.f32 %v1562_v56, 0.0  ;;  %v1191_v60 = vpop.permute.xlu1 %1190  ;;  %v1196_v59 = vpop.permute.xlu0 %1195 }
 0x19b   :  { %1687 = vst [vmem:[%s3102_s3 + $0x10] sm:$0xff] %v1623_v57  ;;  %1688 = vst.msk [vmem:[%s3102_s3 + $0x18] sm:$0xff] %vm78_vm1, %v1624_v55  ;;  %v1339_v3 = vmul.f32 %v1894_v61, %v1191_v60  ;;  %v1340_v1 = vmul.f32 %v1895_v63, %v1191_v60  ;;  %v1341_v0 = vmul.f32 %v1896_v62, %v1196_v59  ;;  %v1907_v60 = vld [vmem:[%s3099_s0 + $0x98] sm:$0xff]  ;;  %v1908_v61 = vld [vmem:[%s3099_s0 + $0xa0] sm:$0xff] }
 0x19c   :  { %1689 = vst [vmem:[%s3102_s3 + $0x20] sm:$0xff] %v1625_v58  ;;  %1690 = vst.msk [vmem:[%s3102_s3 + $0x28] sm:$0xff] %vm78_vm1, %v1626_v23  ;;  %v1342_v16 = vmul.f32 %v1897_v4, %v1196_v59  ;;  %v1906_v58 = vld [vmem:[%s3099_s0 + $0x90] sm:$0xff]  ;;  %v1909_v63 = vld [vmem:[%s3099_s0 + $0xa8] sm:$0xff] }
 0x19e   :  { %v1415_v2 = vpop.permute.xlu1 %1414  ;;  %v1420_v6 = vpop.permute.xlu0 %1419 }
 0x19f   :  { %v1563_v9 = vadd.f32 %v1415_v2, %v1339_v3  ;;  %v1564_v7 = vadd.f32 %v1415_v2, %v1340_v1  ;;  %v1565_v10 = vadd.f32 %v1420_v6, %v1341_v0  ;;  %v1566_v12 = vadd.f32 %v1420_v6, %v1342_v16 }
 0x1a1   :  { %v1627_v14 = vmax.f32 %v1563_v9, 0.0  ;;  %v1628_v11 = vmax.f32 %v1564_v7, 0.0  ;;  %v1629_v38 = vmax.f32 %v1565_v10, 0.0  ;;  %v1630_v15 = vmax.f32 %v1566_v12, 0.0 }
 0x1a2   :  { %v1201_v17 = vpop.permute.xlu1 %1200  ;;  %v1206_v18 = vpop.permute.xlu0 %1205 }
 0x1a3   :  { %1691 = vst [vmem:[%s3102_s3 + $0x30] sm:$0xff] %v1627_v14  ;;  %1692 = vst.msk [vmem:[%s3102_s3 + $0x38] sm:$0xff] %vm78_vm1, %v1628_v11  ;;  %v1343_v33 = vmul.f32 %v1898_v50, %v1201_v17  ;;  %v1344_v20 = vmul.f32 %v1899_v19, %v1201_v17  ;;  %v1345_v24 = vmul.f32 %v1900_v22, %v1206_v18  ;;  %v1911_v17 = vld [vmem:[%s3099_s0 + $0xb8] sm:$0xff]  ;;  %v1912_v50 = vld [vmem:[%s3099_s0 + $0xc0] sm:$0xff] }
 0x1a4   :  { %1693 = vst [vmem:[%s3102_s3 + $0x40] sm:$0xff] %v1629_v38  ;;  %1694 = vst.msk [vmem:[%s3102_s3 + $0x48] sm:$0xff] %vm78_vm1, %v1630_v15  ;;  %v1346_v27 = vmul.f32 %v1901_v25, %v1206_v18  ;;  %v1910_v38 = vld [vmem:[%s3099_s0 + $0xb0] sm:$0xff]  ;;  %v1913_v19 = vld [vmem:[%s3099_s0 + $0xc8] sm:$0xff] }
 0x1a6   :  { %v1425_v8 = vpop.permute.xlu1 %1424  ;;  %v1430_v28 = vpop.permute.xlu0 %1429 }
 0x1a7   :  { %v1567_v26 = vadd.f32 %v1425_v8, %v1343_v33  ;;  %v1568_v5 = vadd.f32 %v1425_v8, %v1344_v20  ;;  %v1569_v21 = vadd.f32 %v1430_v28, %v1345_v24  ;;  %v1570_v30 = vadd.f32 %v1430_v28, %v1346_v27 }
 0x1a9   :  { %v1631_v43 = vmax.f32 %v1567_v26, 0.0  ;;  %v1632_v29 = vmax.f32 %v1568_v5, 0.0  ;;  %v1633_v32 = vmax.f32 %v1569_v21, 0.0  ;;  %v1634_v35 = vmax.f32 %v1570_v30, 0.0 }
 0x1aa   :  { %v1211_v31 = vpop.permute.xlu1 %1210  ;;  %v1216_v34 = vpop.permute.xlu0 %1215 }
 0x1ab   :  { %1695 = vst [vmem:[%s3102_s3 + $0x50] sm:$0xff] %v1631_v43  ;;  %1696 = vst.msk [vmem:[%s3102_s3 + $0x58] sm:$0xff] %vm78_vm1, %v1632_v29  ;;  %v1347_v39 = vmul.f32 %v1902_v36, %v1211_v31  ;;  %v1348_v40 = vmul.f32 %v1903_v37, %v1211_v31  ;;  %v1349_v44 = vmul.f32 %v1904_v42, %v1216_v34  ;;  %v1915_v31 = vld [vmem:[%s3099_s0 + $0xd8] sm:$0xff]  ;;  %v1916_v36 = vld [vmem:[%s3099_s0 + $0xe0] sm:$0xff] }
 0x1ac   :  { %1697 = vst [vmem:[%s3102_s3 + $0x60] sm:$0xff] %v1633_v32  ;;  %1698 = vst.msk [vmem:[%s3102_s3 + $0x68] sm:$0xff] %vm78_vm1, %v1634_v35  ;;  %v1350_v45 = vmul.f32 %v1905_v41, %v1216_v34  ;;  %v1914_v32 = vld [vmem:[%s3099_s0 + $0xd0] sm:$0xff]  ;;  %v1917_v37 = vld [vmem:[%s3099_s0 + $0xe8] sm:$0xff] }
 0x1ae   :  { %v1435_v46 = vpop.permute.xlu1 %1434  ;;  %v1440_v47 = vpop.permute.xlu0 %1439 }
 0x1af   :  { %v1571_v13 = vadd.f32 %v1435_v46, %v1347_v39  ;;  %v1572_v48 = vadd.f32 %v1435_v46, %v1348_v40  ;;  %v1573_v49 = vadd.f32 %v1440_v47, %v1349_v44  ;;  %v1574_v51 = vadd.f32 %v1440_v47, %v1350_v45 }
 0x1b1   :  { %v1635_v53 = vmax.f32 %v1571_v13, 0.0  ;;  %v1636_v52 = vmax.f32 %v1572_v48, 0.0  ;;  %v1637_v54 = vmax.f32 %v1573_v49, 0.0  ;;  %v1638_v56 = vmax.f32 %v1574_v51, 0.0 }
 0x1b2   :  { %v1221_v57 = vpop.permute.xlu1 %1220  ;;  %v1226_v55 = vpop.permute.xlu0 %1225 }
 0x1b3   :  { %1699 = vst [vmem:[%s3102_s3 + $0x70] sm:$0xff] %v1635_v53  ;;  %1700 = vst.msk [vmem:[%s3102_s3 + $0x78] sm:$0xff] %vm78_vm1, %v1636_v52  ;;  %v1351_v23 = vmul.f32 %v1906_v58, %v1221_v57  ;;  %v1352_v59 = vmul.f32 %v1907_v60, %v1221_v57  ;;  %v1353_v3 = vmul.f32 %v1908_v61, %v1226_v55  ;;  %v1919_v57 = vld [vmem:[%s3099_s0 + $0xf8] sm:$0xff]  ;;  %v1920_v58 = vld [vmem:[%s3099_s0 + $0x100] sm:$0xff] }
 0x1b4   :  { %1701 = vst [vmem:[%s3102_s3 + $0x80] sm:$0xff] %v1637_v54  ;;  %1702 = vst.msk [vmem:[%s3102_s3 + $0x88] sm:$0xff] %vm78_vm1, %v1638_v56  ;;  %v1354_v1 = vmul.f32 %v1909_v63, %v1226_v55  ;;  %v1918_v54 = vld [vmem:[%s3099_s0 + $0xf0] sm:$0xff]  ;;  %v1921_v60 = vld [vmem:[%s3099_s0 + $0x108] sm:$0xff] }
 0x1b6   :  { %v1445_v62 = vpop.permute.xlu1 %1444  ;;  %v1450_v0 = vpop.permute.xlu0 %1449 }
 0x1b7   :  { %v1575_v4 = vadd.f32 %v1445_v62, %v1351_v23  ;;  %v1576_v16 = vadd.f32 %v1445_v62, %v1352_v59  ;;  %v1577_v2 = vadd.f32 %v1450_v0, %v1353_v3  ;;  %v1578_v6 = vadd.f32 %v1450_v0, %v1354_v1 }
 0x1b9   :  { %v1639_v9 = vmax.f32 %v1575_v4, 0.0  ;;  %v1640_v7 = vmax.f32 %v1576_v16, 0.0  ;;  %v1641_v10 = vmax.f32 %v1577_v2, 0.0  ;;  %v1642_v12 = vmax.f32 %v1578_v6, 0.0 }
 0x1ba   :  { %v1231_v14 = vpop.permute.xlu1 %1230  ;;  %v1236_v11 = vpop.permute.xlu0 %1235 }
 0x1bb   :  { %1703 = vst [vmem:[%s3102_s3 + $0x90] sm:$0xff] %v1639_v9  ;;  %1704 = vst.msk [vmem:[%s3102_s3 + $0x98] sm:$0xff] %vm78_vm1, %v1640_v7  ;;  %v1355_v15 = vmul.f32 %v1910_v38, %v1231_v14  ;;  %v1356_v18 = vmul.f32 %v1911_v17, %v1231_v14  ;;  %v1357_v33 = vmul.f32 %v1912_v50, %v1236_v11  ;;  %v1923_v14 = vld [vmem:[%s3099_s0 + $0x118] sm:$0xff]  ;;  %v1924_v38 = vld [vmem:[%s3099_s0 + $0x120] sm:$0xff] }
 0x1bc   :  { %1705 = vst [vmem:[%s3102_s3 + $0xa0] sm:$0xff] %v1641_v10  ;;  %1706 = vst.msk [vmem:[%s3102_s3 + $0xa8] sm:$0xff] %vm78_vm1, %v1642_v12  ;;  %v1358_v20 = vmul.f32 %v1913_v19, %v1236_v11  ;;  %v1922_v10 = vld [vmem:[%s3099_s0 + $0x110] sm:$0xff]  ;;  %v1925_v17 = vld [vmem:[%s3099_s0 + $0x128] sm:$0xff] }
 0x1be   :  { %v1455_v22 = vpop.permute.xlu1 %1454  ;;  %v1460_v24 = vpop.permute.xlu0 %1459 }
 0x1bf   :  { %v1579_v25 = vadd.f32 %v1455_v22, %v1355_v15  ;;  %v1580_v27 = vadd.f32 %v1455_v22, %v1356_v18  ;;  %v1581_v8 = vadd.f32 %v1460_v24, %v1357_v33  ;;  %v1582_v28 = vadd.f32 %v1460_v24, %v1358_v20 }
 0x1c1   :  { %v1643_v26 = vmax.f32 %v1579_v25, 0.0  ;;  %v1644_v5 = vmax.f32 %v1580_v27, 0.0  ;;  %v1645_v21 = vmax.f32 %v1581_v8, 0.0  ;;  %v1646_v30 = vmax.f32 %v1582_v28, 0.0 }
 0x1c2   :  { %v1241_v43 = vpop.permute.xlu1 %1240  ;;  %v1246_v29 = vpop.permute.xlu0 %1245 }
 0x1c3   :  { %1707 = vst [vmem:[%s3102_s3 + $0xb0] sm:$0xff] %v1643_v26  ;;  %1708 = vst.msk [vmem:[%s3102_s3 + $0xb8] sm:$0xff] %vm78_vm1, %v1644_v5  ;;  %v1359_v35 = vmul.f32 %v1914_v32, %v1241_v43  ;;  %v1360_v34 = vmul.f32 %v1915_v31, %v1241_v43  ;;  %v1361_v39 = vmul.f32 %v1916_v36, %v1246_v29  ;;  %v1927_v43 = vld [vmem:[%s3099_s0 + $0x138] sm:$0xff]  ;;  %v1928_v32 = vld [vmem:[%s3099_s0 + $0x140] sm:$0xff] }
 0x1c4   :  { %1709 = vst [vmem:[%s3102_s3 + $0xc0] sm:$0xff] %v1645_v21  ;;  %1710 = vst.msk [vmem:[%s3102_s3 + $0xc8] sm:$0xff] %vm78_vm1, %v1646_v30  ;;  %v1362_v40 = vmul.f32 %v1917_v37, %v1246_v29  ;;  %v1926_v21 = vld [vmem:[%s3099_s0 + $0x130] sm:$0xff]  ;;  %v1929_v31 = vld [vmem:[%s3099_s0 + $0x148] sm:$0xff] }
 0x1c6   :  { %v1465_v42 = vpop.permute.xlu1 %1464  ;;  %v1470_v44 = vpop.permute.xlu0 %1469 }
 0x1c7   :  { %v1583_v41 = vadd.f32 %v1465_v42, %v1359_v35  ;;  %v1584_v45 = vadd.f32 %v1465_v42, %v1360_v34  ;;  %v1585_v46 = vadd.f32 %v1470_v44, %v1361_v39  ;;  %v1586_v47 = vadd.f32 %v1470_v44, %v1362_v40 }
 0x1c9   :  { %v1647_v13 = vmax.f32 %v1583_v41, 0.0  ;;  %v1648_v48 = vmax.f32 %v1584_v45, 0.0  ;;  %v1649_v49 = vmax.f32 %v1585_v46, 0.0  ;;  %v1650_v51 = vmax.f32 %v1586_v47, 0.0 }
 0x1ca   :  { %v1251_v53 = vpop.permute.xlu1 %1250  ;;  %v1256_v52 = vpop.permute.xlu0 %1255 }
 0x1cb   :  { %1711 = vst [vmem:[%s3102_s3 + $0xd0] sm:$0xff] %v1647_v13  ;;  %1712 = vst.msk [vmem:[%s3102_s3 + $0xd8] sm:$0xff] %vm78_vm1, %v1648_v48  ;;  %v1363_v56 = vmul.f32 %v1918_v54, %v1251_v53  ;;  %v1364_v55 = vmul.f32 %v1919_v57, %v1251_v53  ;;  %v1365_v23 = vmul.f32 %v1920_v58, %v1256_v52  ;;  %v1931_v53 = vld [vmem:[%s3099_s0 + $0x158] sm:$0xff]  ;;  %v1932_v54 = vld [vmem:[%s3099_s0 + $0x160] sm:$0xff] }
 0x1cc   :  { %1713 = vst [vmem:[%s3102_s3 + $0xe0] sm:$0xff] %v1649_v49  ;;  %1714 = vst.msk [vmem:[%s3102_s3 + $0xe8] sm:$0xff] %vm78_vm1, %v1650_v51  ;;  %v1366_v59 = vmul.f32 %v1921_v60, %v1256_v52  ;;  %v1930_v49 = vld [vmem:[%s3099_s0 + $0x150] sm:$0xff]  ;;  %v1933_v57 = vld [vmem:[%s3099_s0 + $0x168] sm:$0xff] }
 0x1ce   :  { %v1475_v61 = vpop.permute.xlu1 %1474  ;;  %v1480_v3 = vpop.permute.xlu0 %1479 }
 0x1cf   :  { %v1587_v63 = vadd.f32 %v1475_v61, %v1363_v56  ;;  %v1588_v1 = vadd.f32 %v1475_v61, %v1364_v55  ;;  %v1589_v62 = vadd.f32 %v1480_v3, %v1365_v23  ;;  %v1590_v0 = vadd.f32 %v1480_v3, %v1366_v59 }
 0x1d1   :  { %v1651_v4 = vmax.f32 %v1587_v63, 0.0  ;;  %v1652_v16 = vmax.f32 %v1588_v1, 0.0  ;;  %v1653_v2 = vmax.f32 %v1589_v62, 0.0  ;;  %v1654_v6 = vmax.f32 %v1590_v0, 0.0 }
 0x1d2   :  { %v1261_v9 = vpop.permute.xlu1 %1260  ;;  %v1266_v7 = vpop.permute.xlu0 %1265 }
 0x1d3   :  { %1715 = vst [vmem:[%s3102_s3 + $0xf0] sm:$0xff] %v1651_v4  ;;  %1716 = vst.msk [vmem:[%s3102_s3 + $0xf8] sm:$0xff] %vm78_vm1, %v1652_v16  ;;  %v1367_v12 = vmul.f32 %v1922_v10, %v1261_v9  ;;  %v1368_v11 = vmul.f32 %v1923_v14, %v1261_v9  ;;  %v1369_v15 = vmul.f32 %v1924_v38, %v1266_v7  ;;  %v1935_v9 = vld [vmem:[%s3099_s0 + $0x178] sm:$0xff]  ;;  %v1936_v10 = vld [vmem:[%s3099_s0 + $0x180] sm:$0xff] }
 0x1d4   :  { %1717 = vst [vmem:[%s3102_s3 + $0x100] sm:$0xff] %v1653_v2  ;;  %1718 = vst.msk [vmem:[%s3102_s3 + $0x108] sm:$0xff] %vm78_vm1, %v1654_v6  ;;  %v1370_v18 = vmul.f32 %v1925_v17, %v1266_v7  ;;  %v1934_v2 = vld [vmem:[%s3099_s0 + $0x170] sm:$0xff]  ;;  %v1937_v14 = vld [vmem:[%s3099_s0 + $0x188] sm:$0xff] }
 0x1d6   :  { %v1485_v50 = vpop.permute.xlu1 %1484  ;;  %v1490_v33 = vpop.permute.xlu0 %1489 }
 0x1d7   :  { %v1591_v19 = vadd.f32 %v1485_v50, %v1367_v12  ;;  %v1592_v20 = vadd.f32 %v1485_v50, %v1368_v11  ;;  %v1593_v22 = vadd.f32 %v1490_v33, %v1369_v15  ;;  %v1594_v24 = vadd.f32 %v1490_v33, %v1370_v18 }
 0x1d9   :  { %v1655_v25 = vmax.f32 %v1591_v19, 0.0  ;;  %v1656_v27 = vmax.f32 %v1592_v20, 0.0  ;;  %v1657_v8 = vmax.f32 %v1593_v22, 0.0  ;;  %v1658_v28 = vmax.f32 %v1594_v24, 0.0 }
 0x1da   :  { %v1271_v26 = vpop.permute.xlu1 %1270  ;;  %v1276_v5 = vpop.permute.xlu0 %1275 }
 0x1db   :  { %1719 = vst [vmem:[%s3102_s3 + $0x110] sm:$0xff] %v1655_v25  ;;  %1720 = vst.msk [vmem:[%s3102_s3 + $0x118] sm:$0xff] %vm78_vm1, %v1656_v27  ;;  %v1371_v30 = vmul.f32 %v1926_v21, %v1271_v26  ;;  %v1372_v29 = vmul.f32 %v1927_v43, %v1271_v26  ;;  %v1373_v35 = vmul.f32 %v1928_v32, %v1276_v5  ;;  %v1939_v26 = vld [vmem:[%s3099_s0 + $0x198] sm:$0xff]  ;;  %v1940_v21 = vld [vmem:[%s3099_s0 + $0x1a0] sm:$0xff] }
 0x1dc   :  { %1721 = vst [vmem:[%s3102_s3 + $0x120] sm:$0xff] %v1657_v8  ;;  %1722 = vst.msk [vmem:[%s3102_s3 + $0x128] sm:$0xff] %vm78_vm1, %v1658_v28  ;;  %v1374_v34 = vmul.f32 %v1929_v31, %v1276_v5  ;;  %v1938_v8 = vld [vmem:[%s3099_s0 + $0x190] sm:$0xff]  ;;  %v1941_v43 = vld [vmem:[%s3099_s0 + $0x1a8] sm:$0xff] }
 0x1de   :  { %v1495_v36 = vpop.permute.xlu1 %1494  ;;  %v1500_v39 = vpop.permute.xlu0 %1499 }
 0x1df   :  { %v1595_v37 = vadd.f32 %v1495_v36, %v1371_v30  ;;  %v1596_v40 = vadd.f32 %v1495_v36, %v1372_v29  ;;  %v1597_v42 = vadd.f32 %v1500_v39, %v1373_v35  ;;  %v1598_v44 = vadd.f32 %v1500_v39, %v1374_v34 }
 0x1e1   :  { %v1659_v41 = vmax.f32 %v1595_v37, 0.0  ;;  %v1660_v45 = vmax.f32 %v1596_v40, 0.0  ;;  %v1661_v46 = vmax.f32 %v1597_v42, 0.0  ;;  %v1662_v47 = vmax.f32 %v1598_v44, 0.0 }
 0x1e2   :  { %v1281_v13 = vpop.permute.xlu1 %1280  ;;  %v1286_v48 = vpop.permute.xlu0 %1285 }
 0x1e3   :  { %1723 = vst [vmem:[%s3102_s3 + $0x130] sm:$0xff] %v1659_v41  ;;  %1724 = vst.msk [vmem:[%s3102_s3 + $0x138] sm:$0xff] %vm78_vm1, %v1660_v45  ;;  %v1375_v51 = vmul.f32 %v1930_v49, %v1281_v13  ;;  %v1376_v52 = vmul.f32 %v1931_v53, %v1281_v13  ;;  %v1377_v56 = vmul.f32 %v1932_v54, %v1286_v48  ;;  %v1943_v13 = vld [vmem:[%s3099_s0 + $0x1b8] sm:$0xff]  ;;  %v1944_v49 = vld [vmem:[%s3099_s0 + $0x1c0] sm:$0xff] }
 0x1e4   :  { %1725 = vst [vmem:[%s3102_s3 + $0x140] sm:$0xff] %v1661_v46  ;;  %1726 = vst.msk [vmem:[%s3102_s3 + $0x148] sm:$0xff] %vm78_vm1, %v1662_v47  ;;  %v1378_v55 = vmul.f32 %v1933_v57, %v1286_v48  ;;  %v1942_v46 = vld [vmem:[%s3099_s0 + $0x1b0] sm:$0xff]  ;;  %v1945_v53 = vld [vmem:[%s3099_s0 + $0x1c8] sm:$0xff] }
 0x1e6   :  { %v1505_v58 = vpop.permute.xlu1 %1504  ;;  %v1510_v23 = vpop.permute.xlu0 %1509 }
 0x1e7   :  { %v1599_v60 = vadd.f32 %v1505_v58, %v1375_v51  ;;  %v1600_v59 = vadd.f32 %v1505_v58, %v1376_v52  ;;  %v1601_v61 = vadd.f32 %v1510_v23, %v1377_v56  ;;  %v1602_v3 = vadd.f32 %v1510_v23, %v1378_v55 }
 0x1e9   :  { %v1663_v63 = vmax.f32 %v1599_v60, 0.0  ;;  %v1664_v1 = vmax.f32 %v1600_v59, 0.0  ;;  %v1665_v62 = vmax.f32 %v1601_v61, 0.0  ;;  %v1666_v0 = vmax.f32 %v1602_v3, 0.0 }
 0x1ea   :  { %v1291_v4 = vpop.permute.xlu1 %1290  ;;  %v1296_v16 = vpop.permute.xlu0 %1295 }
 0x1eb   :  { %1727 = vst [vmem:[%s3102_s3 + $0x150] sm:$0xff] %v1663_v63  ;;  %1728 = vst.msk [vmem:[%s3102_s3 + $0x158] sm:$0xff] %vm78_vm1, %v1664_v1  ;;  %v1379_v6 = vmul.f32 %v1934_v2, %v1291_v4  ;;  %v1380_v7 = vmul.f32 %v1935_v9, %v1291_v4  ;;  %v1381_v12 = vmul.f32 %v1936_v10, %v1296_v16  ;;  %v1947_v4 = vld [vmem:[%s3099_s0 + $0x1d8] sm:$0xff]  ;;  %v1948_v2 = vld [vmem:[%s3099_s0 + $0x1e0] sm:$0xff] }
 0x1ec   :  { %1729 = vst [vmem:[%s3102_s3 + $0x160] sm:$0xff] %v1665_v62  ;;  %1730 = vst.msk [vmem:[%s3102_s3 + $0x168] sm:$0xff] %vm78_vm1, %v1666_v0  ;;  %v1382_v11 = vmul.f32 %v1937_v14, %v1296_v16  ;;  %v1946_v62 = vld [vmem:[%s3099_s0 + $0x1d0] sm:$0xff]  ;;  %v1949_v9 = vld [vmem:[%s3099_s0 + $0x1e8] sm:$0xff] }
 0x1ee   :  { %v1515_v38 = vpop.permute.xlu1 %1514  ;;  %v1520_v15 = vpop.permute.xlu0 %1519 }
 0x1ef   :  { %v1603_v17 = vadd.f32 %v1515_v38, %v1379_v6  ;;  %v1604_v18 = vadd.f32 %v1515_v38, %v1380_v7  ;;  %v1605_v50 = vadd.f32 %v1520_v15, %v1381_v12  ;;  %v1606_v33 = vadd.f32 %v1520_v15, %v1382_v11 }
 0x1f1   :  { %v1667_v19 = vmax.f32 %v1603_v17, 0.0  ;;  %v1668_v20 = vmax.f32 %v1604_v18, 0.0  ;;  %v1669_v22 = vmax.f32 %v1605_v50, 0.0  ;;  %v1670_v24 = vmax.f32 %v1606_v33, 0.0 }
 0x1f2   :  { %v1301_v25 = vpop.permute.xlu1 %1300  ;;  %v1306_v27 = vpop.permute.xlu0 %1305 }
 0x1f3   :  { %1731 = vst [vmem:[%s3102_s3 + $0x170] sm:$0xff] %v1667_v19  ;;  %1732 = vst.msk [vmem:[%s3102_s3 + $0x178] sm:$0xff] %vm78_vm1, %v1668_v20  ;;  %v1383_v28 = vmul.f32 %v1938_v8, %v1301_v25  ;;  %v1384_v5 = vmul.f32 %v1939_v26, %v1301_v25  ;;  %v1385_v30 = vmul.f32 %v1940_v21, %v1306_v27  ;;  %v1950_v20 = vld [vmem:[%s3099_s0 + $0x1f0] sm:$0xff] }
 0x1f4   :  { %1733 = vst [vmem:[%s3102_s3 + $0x180] sm:$0xff] %v1669_v22  ;;  %1734 = vst.msk [vmem:[%s3102_s3 + $0x188] sm:$0xff] %vm78_vm1, %v1670_v24  ;;  %v1386_v29 = vmul.f32 %v1941_v43, %v1306_v27  ;;  %v1951_v24 = vld [vmem:[%s3099_s0 + $0x1f8] sm:$0xff] }
 0x1f6   :  { %v1525_v32 = vpop.permute.xlu1 %1524  ;;  %v1530_v35 = vpop.permute.xlu0 %1529 }
 0x1f7   :  { %v1607_v31 = vadd.f32 %v1525_v32, %v1383_v28  ;;  %v1608_v34 = vadd.f32 %v1525_v32, %v1384_v5  ;;  %v1609_v36 = vadd.f32 %v1530_v35, %v1385_v30  ;;  %v1610_v39 = vadd.f32 %v1530_v35, %v1386_v29 }
 0x1f9   :  { %v1671_v37 = vmax.f32 %v1607_v31, 0.0  ;;  %v1672_v40 = vmax.f32 %v1608_v34, 0.0  ;;  %v1673_v42 = vmax.f32 %v1609_v36, 0.0  ;;  %v1674_v44 = vmax.f32 %v1610_v39, 0.0 }
 0x1fa   :  { %v1311_v41 = vpop.permute.xlu1 %1310  ;;  %v1316_v45 = vpop.permute.xlu0 %1315 }
 0x1fb   :  { %1735 = vst [vmem:[%s3102_s3 + $0x190] sm:$0xff] %v1671_v37  ;;  %1736 = vst.msk [vmem:[%s3102_s3 + $0x198] sm:$0xff] %vm78_vm1, %v1672_v40  ;;  %v1387_v47 = vmul.f32 %v1942_v46, %v1311_v41  ;;  %v1388_v48 = vmul.f32 %v1943_v13, %v1311_v41  ;;  %v1389_v51 = vmul.f32 %v1944_v49, %v1316_v45 }
 0x1fc   :  { %1737 = vst [vmem:[%s3102_s3 + $0x1a0] sm:$0xff] %v1673_v42  ;;  %1738 = vst.msk [vmem:[%s3102_s3 + $0x1a8] sm:$0xff] %vm78_vm1, %v1674_v44  ;;  %v1390_v52 = vmul.f32 %v1945_v53, %v1316_v45 }
 0x1fe   :  { %v1535_v54 = vpop.permute.xlu1 %1534  ;;  %v1540_v56 = vpop.permute.xlu0 %1539 }
 0x1ff   :  { %v1611_v57 = vadd.f32 %v1535_v54, %v1387_v47  ;;  %v1612_v55 = vadd.f32 %v1535_v54, %v1388_v48  ;;  %v1613_v58 = vadd.f32 %v1540_v56, %v1389_v51  ;;  %v1614_v23 = vadd.f32 %v1540_v56, %v1390_v52 }
 0x201   :  { %v1675_v60 = vmax.f32 %v1611_v57, 0.0  ;;  %v1676_v59 = vmax.f32 %v1612_v55, 0.0  ;;  %v1677_v61 = vmax.f32 %v1613_v58, 0.0  ;;  %v1678_v3 = vmax.f32 %v1614_v23, 0.0 }
 0x202   :  { %v1321_v63 = vpop.permute.xlu1 %1320  ;;  %v1326_v1 = vpop.permute.xlu0 %1325 }
 0x203   :  { %1739 = vst [vmem:[%s3102_s3 + $0x1b0] sm:$0xff] %v1675_v60  ;;  %1740 = vst.msk [vmem:[%s3102_s3 + $0x1b8] sm:$0xff] %vm78_vm1, %v1676_v59  ;;  %v1391_v0 = vmul.f32 %v1946_v62, %v1321_v63  ;;  %v1392_v16 = vmul.f32 %v1947_v4, %v1321_v63  ;;  %v1393_v6 = vmul.f32 %v1948_v2, %v1326_v1 }
 0x204   :  { %1741 = vst [vmem:[%s3102_s3 + $0x1c0] sm:$0xff] %v1677_v61  ;;  %1742 = vst.msk [vmem:[%s3102_s3 + $0x1c8] sm:$0xff] %vm78_vm1, %v1678_v3  ;;  %v1394_v7 = vmul.f32 %v1949_v9, %v1326_v1 }
 0x206   :  { %v1545_v10 = vpop.permute.xlu1 %1544  ;;  %v1550_v12 = vpop.permute.xlu0 %1549 }
 0x207   :  { %v1615_v14 = vadd.f32 %v1545_v10, %v1391_v0  ;;  %v1616_v11 = vadd.f32 %v1545_v10, %v1392_v16  ;;  %v1617_v38 = vadd.f32 %v1550_v12, %v1393_v6  ;;  %v1618_v15 = vadd.f32 %v1550_v12, %v1394_v7 }
 0x209   :  { %v1679_v17 = vmax.f32 %v1615_v14, 0.0  ;;  %v1680_v18 = vmax.f32 %v1616_v11, 0.0  ;;  %v1681_v50 = vmax.f32 %v1617_v38, 0.0  ;;  %v1682_v33 = vmax.f32 %v1618_v15, 0.0 }
 0x20a   :  { %v1331_v19 = vpop.permute.xlu1 %1330 }
 0x20b   :  { %1743 = vst [vmem:[%s3102_s3 + $0x1d0] sm:$0xff] %v1679_v17  ;;  %1744 = vst.msk [vmem:[%s3102_s3 + $0x1d8] sm:$0xff] %vm78_vm1, %v1680_v18  ;;  %v1395_v22 = vmul.f32 %v1950_v20, %v1331_v19  ;;  %v1396_v25 = vmul.f32 %v1951_v24, %v1331_v19 }
 0x20c   :  { %1745 = vst [vmem:[%s3102_s3 + $0x1e0] sm:$0xff] %v1681_v50  ;;  %1746 = vst.msk [vmem:[%s3102_s3 + $0x1e8] sm:$0xff] %vm78_vm1, %v1682_v33 }
 0x20e   :  { %v1555_v27 = vpop.permute.xlu1 %1554 }
 0x20f   :  { %v1619_v8 = vadd.f32 %v1555_v27, %v1395_v22  ;;  %v1620_v28 = vadd.f32 %v1555_v27, %v1396_v25 }
 0x211   :  { %v1683_v26 = vmax.f32 %v1619_v8, 0.0  ;;  %v1684_v5 = vmax.f32 %v1620_v28, 0.0 }
 0x213   :  { %1747 = vst [vmem:[%s3102_s3 + $0x1f0] sm:$0xff] %v1683_v26  ;;  %1748 = vst.msk [vmem:[%s3102_s3 + $0x1f8] sm:$0xff] %vm78_vm1, %v1684_v5 }

</bundles_post_ra>
